<compile_context>
chip_gen: v7x
topology: tpu7x:2x2x1
jax: 0.10.0
libtpu: 0.0.40
codegen_flags: <defaults>
</compile_context>

<pallas_src>
import functools
import math

import numpy as np
import jax
import jax.numpy as jnp
from jax.experimental import pallas as pl
from jax.experimental.pallas import tpu as pltpu


# ----------------------------------------------------------------------------
# Bicubic interpolation as a dense 1-D interpolation matrix.
# Matches torch.nn.functional.interpolate(mode="bicubic", align_corners=False).
# ----------------------------------------------------------------------------
def _bicubic_matrix(out_size: int, in_size: int, A: float = -0.75) -> np.ndarray:
    def k1(x):  # |x| <= 1
        return ((A + 2.0) * x - (A + 3.0)) * x * x + 1.0

    def k2(x):  # 1 < |x| < 2
        return ((A * x - 5.0 * A) * x + 8.0 * A) * x - 4.0 * A

    M = np.zeros((out_size, in_size), dtype=np.float64)
    scale = in_size / out_size
    for o in range(out_size):
        src = (o + 0.5) * scale - 0.5
        fl = int(math.floor(src))
        t = src - fl
        w = (k2(t + 1.0), k1(t), k1(1.0 - t), k2(2.0 - t))
        for k in range(4):
            idx = min(max(fl - 1 + k, 0), in_size - 1)  # border clamp, like torch
            M[o, idx] += w[k]
    return M.astype(np.float32)


# ----------------------------------------------------------------------------
# Fused "upsample + zero-pad + 3x3 tap" operator (data-independent, cached).
#   W_tap[s_in, t, s_out] = wh[h + ty - 1, h_in] * ww[w + tx - 1, w_in]
# with zero rows where the shifted output index falls outside the image
# (this reproduces the conv's zero padding exactly).  Returned as
# (Hin*Win, 9, Hout*Wout) float32.
# ----------------------------------------------------------------------------
@functools.lru_cache(maxsize=None)
def _tap_matrix(hin: int, win: int, hout: int, wout: int) -> np.ndarray:
    wh = _bicubic_matrix(hout, hin)   # (hout, hin)
    ww = _bicubic_matrix(wout, win)   # (wout, win)

    def shifted(m, d):
        out_size = m.shape[0]
        s = np.zeros_like(m)
        lo = max(0, -d)
        hi = min(out_size, out_size - d)
        if hi > lo:
            s[lo:hi] = m[lo + d: hi + d]
        return s

    taps = np.empty((hin * win, 9, hout * wout), np.float32)
    for ky in range(3):
        whs = shifted(wh, ky - 1)
        for kx in range(3):
            wws = shifted(ww, kx - 1)
            blk = np.einsum("ph,qw->hwpq", whs, wws).reshape(hin * win, hout * wout)
            taps[:, ky * 3 + kx, :] = blk
    return np.ascontiguousarray(taps)


# ----------------------------------------------------------------------------
# Pallas kernel: whole batch in one invocation.
#   x_ref : (N, Cin*Hin*Win)              bf16, lane-dense
#   w_ref : (Cin*Hin*Win, Cout*Hout*Wout) bf16 fused upsample/pad/conv operator
#   o_ref : (N, Cout*Hout*Wout)           f32 normalized output, lane-dense
# ----------------------------------------------------------------------------
def _decoder_layer_kernel(x_ref, w_ref, o_ref, *, hw_out: int, eps: float):
    # Upsample + pad + 3x3 conv for the whole batch: ONE bf16 MXU matmul, f32 accum.
    conv = jnp.dot(x_ref[...], w_ref[...],
                   preferred_element_type=jnp.float32)        # (N, Cout*HWout) f32

    # InstanceNorm2d (affine=False): per (n, out-channel) stats over the HWout spatial
    # lanes.  Segments are static, lane-aligned 256-wide slices (no relayout); two-pass
    # mean / mean((x-mean)^2) for accuracy; rsqrt lands on the EUP.
    n_seg = o_ref.shape[-1] // hw_out
    for o in range(n_seg):
        lo = o * hw_out
        seg = conv[:, lo:lo + hw_out]
        mean = jnp.mean(seg, axis=-1, keepdims=True)
        cen = seg - mean
        var = jnp.mean(cen * cen, axis=-1, keepdims=True)
        o_ref[:, lo:lo + hw_out] = (cen * jax.lax.rsqrt(var + eps)).astype(o_ref.dtype)


# ----------------------------------------------------------------------------
# Wrapper (NCHW in / NCHW out, like the PyTorch module).  Only reshapes and one
# small einsum at the boundary — no transposes, no kron chains.
# ----------------------------------------------------------------------------
def decoder_layer_forward(x_nchw, conv_w, h, w):
    N, Cin, Hin, Win = x_nchw.shape
    Cout = conv_w.shape[0]
    Hout, Wout = int(h), int(w)
    hw_in, hw_out = Hin * Win, Hout * Wout

    # Lane-dense bf16 activation: (N, Cin*Hin*Win).
    x2 = x_nchw.reshape(N, Cin * hw_in).astype(jnp.bfloat16)

    # Fused operator: W_comb[(c, s_in), (o, s_out)] = sum_t conv_w[o,c,t] * W_tap[s_in,t,s_out]
    wtap3 = jnp.asarray(_tap_matrix(Hin, Win, Hout, Wout))    # (hw_in, 9, hw_out) f32
    w9 = conv_w.reshape(Cout, Cin, 9).astype(jnp.float32)
    w_comb = jnp.einsum("oct,itj->cioj", w9, wtap3)
    w_comb = w_comb.reshape(Cin * hw_in, Cout * hw_out).astype(jnp.bfloat16)

    flops = 2 * N * (Cin * hw_in) * (Cout * hw_out)
    bytes_accessed = (x2.size * 2) + (w_comb.size * 2) + (N * Cout * hw_out * 4)

    kernel = functools.partial(_decoder_layer_kernel, hw_out=hw_out, eps=1e-5)
    out2 = pl.pallas_call(
        kernel,
        out_shape=jax.ShapeDtypeStruct((N, Cout * hw_out), jnp.float32),
        in_specs=[
            pl.BlockSpec(memory_space=pltpu.MemorySpace.VMEM),
            pl.BlockSpec(memory_space=pltpu.MemorySpace.VMEM),
        ],
        out_specs=pl.BlockSpec(memory_space=pltpu.MemorySpace.VMEM),
        cost_estimate=pl.CostEstimate(
            flops=flops, transcendentals=N * Cout, bytes_accessed=bytes_accessed),
    )(x2, w_comb)

    return out2.reshape(N, Cout, Hout, Wout)


# ----------------------------------------------------------------------------
if __name__ == "__main__":
    key = jax.random.PRNGKey(0)
    kx, kw = jax.random.split(key)

    # DecoderLayer(input_channels=4, output_channels=8, kernels_and_ratios=[(3, 1)])
    # with set_h_w(16, 16)
    N, Cin, Hin, Win = 2, 4, 8, 8
    Cout = 8
    Hout, Wout = 16, 16

    x = jax.random.normal(kx, (N, Cin, Hin, Win), jnp.float32)
    conv_w = jax.random.normal(kw, (Cout, Cin, 3, 3), jnp.float32) / np.sqrt(Cin * 9)

    fwd = jax.jit(decoder_layer_forward, static_argnums=(2, 3))
    out = jax.block_until_ready(fwd(x, conv_w, Hout, Wout))

    # pure-JAX float32 reference (same bicubic matrices / conv / instance norm).
    wh = jnp.asarray(_bicubic_matrix(Hout, Hin))
    ww = jnp.asarray(_bicubic_matrix(Wout, Win))
    up = jnp.einsum("ph,qw,nchw->ncpq", wh, ww, x)
    conv = jax.lax.conv_general_dilated(
        up, conv_w, (1, 1), ((1, 1), (1, 1)),
        dimension_numbers=("NCHW", "OIHW", "NCHW"),
    )
    mean = conv.mean(axis=(2, 3), keepdims=True)
    var = jnp.mean((conv - mean) ** 2, axis=(2, 3), keepdims=True)
    ref = (conv - mean) * jax.lax.rsqrt(var + 1e-5)

    # bf16 MXU operands vs. f32 reference: observed error ~1e-2; 5e-2 still catches
    # any structural bug (wrong taps / padding / norm give O(1) errors).
    err = float(np.max(np.abs(np.asarray(out) - np.asarray(ref))))
    assert np.allclose(np.asarray(out), np.asarray(ref), atol=5e-2, rtol=5e-2), err

    print("KERNEL_OK")
</pallas_src>

<mosaic_0001>
module attributes {stable_mosaic.version = 11 : i64} {
  func.func @_decoder_layer_kernel(%arg0: memref<2x256xbf16, #tpu.memory_space<vmem>>, %arg1: memref<256x2048xbf16, #tpu.memory_space<vmem>>, %arg2: memref<2x2048xf32, #tpu.memory_space<vmem>>) attributes {dimension_semantics = [], scalar_prefetch = 0 : i64, scratch_operands = 0 : i64, tpu.core_type = #tpu.core_type<tc>} {
    %c0 = arith.constant 0 : index
    %c0_0 = arith.constant 0 : index
    %0 = vector.load %arg0[%c0, %c0_0] : memref<2x256xbf16, #tpu.memory_space<vmem>>, vector<2x256xbf16>
    %c0_1 = arith.constant 0 : index
    %c0_2 = arith.constant 0 : index
    %1 = vector.load %arg1[%c0_1, %c0_2] : memref<256x2048xbf16, #tpu.memory_space<vmem>>, vector<256x2048xbf16>
    %cst = arith.constant dense<0.000000e+00> : vector<2x2048xf32>
    %2 = tpu.matmul %0, %1, %cst {dimension_numbers = #tpu.dot_dimension_numbers<[1], [0], [0], [1], [0, 0, 1, 1], [], []>} : vector<2x256xbf16>, vector<256x2048xbf16>, vector<2x2048xf32> -> vector<2x2048xf32>
    %3 = vector.extract_strided_slice %2 {offsets = [0, 0], sizes = [2, 256], strides = [1, 1]} : vector<2x2048xf32> to vector<2x256xf32>
    %cst_3 = arith.constant dense<0.000000e+00> : vector<2xf32>
    %4 = vector.multi_reduction <add>, %3, %cst_3 [1] : vector<2x256xf32> to vector<2xf32>
    %5 = vector.shape_cast %4 : vector<2xf32> to vector<2x1xf32>
    %cst_4 = arith.constant 2.560000e+02 : f32
    %6 = vector.broadcast %cst_4 : f32 to vector<2x1xf32>
    %7 = arith.divf %5, %6 : vector<2x1xf32>
    %8 = vector.broadcast %7 : vector<2x1xf32> to vector<2x256xf32>
    %9 = arith.subf %3, %8 : vector<2x256xf32>
    %10 = arith.mulf %9, %9 : vector<2x256xf32>
    %cst_5 = arith.constant dense<0.000000e+00> : vector<2xf32>
    %11 = vector.multi_reduction <add>, %10, %cst_5 [1] : vector<2x256xf32> to vector<2xf32>
    %12 = vector.shape_cast %11 : vector<2xf32> to vector<2x1xf32>
    %cst_6 = arith.constant 2.560000e+02 : f32
    %13 = vector.broadcast %cst_6 : f32 to vector<2x1xf32>
    %14 = arith.divf %12, %13 : vector<2x1xf32>
    %cst_7 = arith.constant 9.99999974E-6 : f32
    %15 = vector.broadcast %cst_7 : f32 to vector<2x1xf32>
    %16 = arith.addf %14, %15 : vector<2x1xf32>
    %17 = math.rsqrt %16 : vector<2x1xf32>
    %18 = vector.broadcast %17 : vector<2x1xf32> to vector<2x256xf32>
    %19 = arith.mulf %9, %18 : vector<2x256xf32>
    %c0_8 = arith.constant 0 : index
    %c0_9 = arith.constant 0 : index
    %20 = vector.load %arg2[%c0_8, %c0_9] : memref<2x2048xf32, #tpu.memory_space<vmem>>, vector<2x256xf32>
    tpu.vector_store %arg2[%c0_8, %c0_9], %19 {strides = array<i32>} : memref<2x2048xf32, #tpu.memory_space<vmem>>, vector<2x256xf32>,
    %21 = vector.extract_strided_slice %2 {offsets = [0, 256], sizes = [2, 256], strides = [1, 1]} : vector<2x2048xf32> to vector<2x256xf32>
    %cst_10 = arith.constant dense<0.000000e+00> : vector<2xf32>
    %22 = vector.multi_reduction <add>, %21, %cst_10 [1] : vector<2x256xf32> to vector<2xf32>
    %23 = vector.shape_cast %22 : vector<2xf32> to vector<2x1xf32>
    %cst_11 = arith.constant 2.560000e+02 : f32
    %24 = vector.broadcast %cst_11 : f32 to vector<2x1xf32>
    %25 = arith.divf %23, %24 : vector<2x1xf32>
    %26 = vector.broadcast %25 : vector<2x1xf32> to vector<2x256xf32>
    %27 = arith.subf %21, %26 : vector<2x256xf32>
    %28 = arith.mulf %27, %27 : vector<2x256xf32>
    %cst_12 = arith.constant dense<0.000000e+00> : vector<2xf32>
    %29 = vector.multi_reduction <add>, %28, %cst_12 [1] : vector<2x256xf32> to vector<2xf32>
    %30 = vector.shape_cast %29 : vector<2xf32> to vector<2x1xf32>
    %cst_13 = arith.constant 2.560000e+02 : f32
    %31 = vector.broadcast %cst_13 : f32 to vector<2x1xf32>
    %32 = arith.divf %30, %31 : vector<2x1xf32>
    %cst_14 = arith.constant 9.99999974E-6 : f32
    %33 = vector.broadcast %cst_14 : f32 to vector<2x1xf32>
    %34 = arith.addf %32, %33 : vector<2x1xf32>
    %35 = math.rsqrt %34 : vector<2x1xf32>
    %36 = vector.broadcast %35 : vector<2x1xf32> to vector<2x256xf32>
    %37 = arith.mulf %27, %36 : vector<2x256xf32>
    %c0_15 = arith.constant 0 : index
    %c256 = arith.constant 256 : index
    %38 = vector.load %arg2[%c0_15, %c256] : memref<2x2048xf32, #tpu.memory_space<vmem>>, vector<2x256xf32>
    tpu.vector_store %arg2[%c0_15, %c256], %37 {strides = array<i32>} : memref<2x2048xf32, #tpu.memory_space<vmem>>, vector<2x256xf32>,
    %39 = vector.extract_strided_slice %2 {offsets = [0, 512], sizes = [2, 256], strides = [1, 1]} : vector<2x2048xf32> to vector<2x256xf32>
    %cst_16 = arith.constant dense<0.000000e+00> : vector<2xf32>
    %40 = vector.multi_reduction <add>, %39, %cst_16 [1] : vector<2x256xf32> to vector<2xf32>
    %41 = vector.shape_cast %40 : vector<2xf32> to vector<2x1xf32>
    %cst_17 = arith.constant 2.560000e+02 : f32
    %42 = vector.broadcast %cst_17 : f32 to vector<2x1xf32>
    %43 = arith.divf %41, %42 : vector<2x1xf32>
    %44 = vector.broadcast %43 : vector<2x1xf32> to vector<2x256xf32>
    %45 = arith.subf %39, %44 : vector<2x256xf32>
    %46 = arith.mulf %45, %45 : vector<2x256xf32>
    %cst_18 = arith.constant dense<0.000000e+00> : vector<2xf32>
    %47 = vector.multi_reduction <add>, %46, %cst_18 [1] : vector<2x256xf32> to vector<2xf32>
    %48 = vector.shape_cast %47 : vector<2xf32> to vector<2x1xf32>
    %cst_19 = arith.constant 2.560000e+02 : f32
    %49 = vector.broadcast %cst_19 : f32 to vector<2x1xf32>
    %50 = arith.divf %48, %49 : vector<2x1xf32>
    %cst_20 = arith.constant 9.99999974E-6 : f32
    %51 = vector.broadcast %cst_20 : f32 to vector<2x1xf32>
    %52 = arith.addf %50, %51 : vector<2x1xf32>
    %53 = math.rsqrt %52 : vector<2x1xf32>
    %54 = vector.broadcast %53 : vector<2x1xf32> to vector<2x256xf32>
    %55 = arith.mulf %45, %54 : vector<2x256xf32>
    %c0_21 = arith.constant 0 : index
    %c512 = arith.constant 512 : index
    %56 = vector.load %arg2[%c0_21, %c512] : memref<2x2048xf32, #tpu.memory_space<vmem>>, vector<2x256xf32>
    tpu.vector_store %arg2[%c0_21, %c512], %55 {strides = array<i32>} : memref<2x2048xf32, #tpu.memory_space<vmem>>, vector<2x256xf32>,
    %57 = vector.extract_strided_slice %2 {offsets = [0, 768], sizes = [2, 256], strides = [1, 1]} : vector<2x2048xf32> to vector<2x256xf32>
    %cst_22 = arith.constant dense<0.000000e+00> : vector<2xf32>
    %58 = vector.multi_reduction <add>, %57, %cst_22 [1] : vector<2x256xf32> to vector<2xf32>
    %59 = vector.shape_cast %58 : vector<2xf32> to vector<2x1xf32>
    %cst_23 = arith.constant 2.560000e+02 : f32
    %60 = vector.broadcast %cst_23 : f32 to vector<2x1xf32>
    %61 = arith.divf %59, %60 : vector<2x1xf32>
    %62 = vector.broadcast %61 : vector<2x1xf32> to vector<2x256xf32>
    %63 = arith.subf %57, %62 : vector<2x256xf32>
    %64 = arith.mulf %63, %63 : vector<2x256xf32>
    %cst_24 = arith.constant dense<0.000000e+00> : vector<2xf32>
    %65 = vector.multi_reduction <add>, %64, %cst_24 [1] : vector<2x256xf32> to vector<2xf32>
    %66 = vector.shape_cast %65 : vector<2xf32> to vector<2x1xf32>
    %cst_25 = arith.constant 2.560000e+02 : f32
    %67 = vector.broadcast %cst_25 : f32 to vector<2x1xf32>
    %68 = arith.divf %66, %67 : vector<2x1xf32>
    %cst_26 = arith.constant 9.99999974E-6 : f32
    %69 = vector.broadcast %cst_26 : f32 to vector<2x1xf32>
    %70 = arith.addf %68, %69 : vector<2x1xf32>
    %71 = math.rsqrt %70 : vector<2x1xf32>
    %72 = vector.broadcast %71 : vector<2x1xf32> to vector<2x256xf32>
    %73 = arith.mulf %63, %72 : vector<2x256xf32>
    %c0_27 = arith.constant 0 : index
    %c768 = arith.constant 768 : index
    %74 = vector.load %arg2[%c0_27, %c768] : memref<2x2048xf32, #tpu.memory_space<vmem>>, vector<2x256xf32>
    tpu.vector_store %arg2[%c0_27, %c768], %73 {strides = array<i32>} : memref<2x2048xf32, #tpu.memory_space<vmem>>, vector<2x256xf32>,
    %75 = vector.extract_strided_slice %2 {offsets = [0, 1024], sizes = [2, 256], strides = [1, 1]} : vector<2x2048xf32> to vector<2x256xf32>
    %cst_28 = arith.constant dense<0.000000e+00> : vector<2xf32>
    %76 = vector.multi_reduction <add>, %75, %cst_28 [1] : vector<2x256xf32> to vector<2xf32>
    %77 = vector.shape_cast %76 : vector<2xf32> to vector<2x1xf32>
    %cst_29 = arith.constant 2.560000e+02 : f32
    %78 = vector.broadcast %cst_29 : f32 to vector<2x1xf32>
    %79 = arith.divf %77, %78 : vector<2x1xf32>
    %80 = vector.broadcast %79 : vector<2x1xf32> to vector<2x256xf32>
    %81 = arith.subf %75, %80 : vector<2x256xf32>
    %82 = arith.mulf %81, %81 : vector<2x256xf32>
    %cst_30 = arith.constant dense<0.000000e+00> : vector<2xf32>
    %83 = vector.multi_reduction <add>, %82, %cst_30 [1] : vector<2x256xf32> to vector<2xf32>
    %84 = vector.shape_cast %83 : vector<2xf32> to vector<2x1xf32>
    %cst_31 = arith.constant 2.560000e+02 : f32
    %85 = vector.broadcast %cst_31 : f32 to vector<2x1xf32>
    %86 = arith.divf %84, %85 : vector<2x1xf32>
    %cst_32 = arith.constant 9.99999974E-6 : f32
    %87 = vector.broadcast %cst_32 : f32 to vector<2x1xf32>
    %88 = arith.addf %86, %87 : vector<2x1xf32>
    %89 = math.rsqrt %88 : vector<2x1xf32>
    %90 = vector.broadcast %89 : vector<2x1xf32> to vector<2x256xf32>
    %91 = arith.mulf %81, %90 : vector<2x256xf32>
    %c0_33 = arith.constant 0 : index
    %c1024 = arith.constant 1024 : index
    %92 = vector.load %arg2[%c0_33, %c1024] : memref<2x2048xf32, #tpu.memory_space<vmem>>, vector<2x256xf32>
    tpu.vector_store %arg2[%c0_33, %c1024], %91 {strides = array<i32>} : memref<2x2048xf32, #tpu.memory_space<vmem>>, vector<2x256xf32>,
    %93 = vector.extract_strided_slice %2 {offsets = [0, 1280], sizes = [2, 256], strides = [1, 1]} : vector<2x2048xf32> to vector<2x256xf32>
    %cst_34 = arith.constant dense<0.000000e+00> : vector<2xf32>
    %94 = vector.multi_reduction <add>, %93, %cst_34 [1] : vector<2x256xf32> to vector<2xf32>
    %95 = vector.shape_cast %94 : vector<2xf32> to vector<2x1xf32>
    %cst_35 = arith.constant 2.560000e+02 : f32
    %96 = vector.broadcast %cst_35 : f32 to vector<2x1xf32>
    %97 = arith.divf %95, %96 : vector<2x1xf32>
    %98 = vector.broadcast %97 : vector<2x1xf32> to vector<2x256xf32>
    %99 = arith.subf %93, %98 : vector<2x256xf32>
    %100 = arith.mulf %99, %99 : vector<2x256xf32>
    %cst_36 = arith.constant dense<0.000000e+00> : vector<2xf32>
    %101 = vector.multi_reduction <add>, %100, %cst_36 [1] : vector<2x256xf32> to vector<2xf32>
    %102 = vector.shape_cast %101 : vector<2xf32> to vector<2x1xf32>
    %cst_37 = arith.constant 2.560000e+02 : f32
    %103 = vector.broadcast %cst_37 : f32 to vector<2x1xf32>
    %104 = arith.divf %102, %103 : vector<2x1xf32>
    %cst_38 = arith.constant 9.99999974E-6 : f32
    %105 = vector.broadcast %cst_38 : f32 to vector<2x1xf32>
    %106 = arith.addf %104, %105 : vector<2x1xf32>
    %107 = math.rsqrt %106 : vector<2x1xf32>
    %108 = vector.broadcast %107 : vector<2x1xf32> to vector<2x256xf32>
    %109 = arith.mulf %99, %108 : vector<2x256xf32>
    %c0_39 = arith.constant 0 : index
    %c1280 = arith.constant 1280 : index
    %110 = vector.load %arg2[%c0_39, %c1280] : memref<2x2048xf32, #tpu.memory_space<vmem>>, vector<2x256xf32>
    tpu.vector_store %arg2[%c0_39, %c1280], %109 {strides = array<i32>} : memref<2x2048xf32, #tpu.memory_space<vmem>>, vector<2x256xf32>,
    %111 = vector.extract_strided_slice %2 {offsets = [0, 1536], sizes = [2, 256], strides = [1, 1]} : vector<2x2048xf32> to vector<2x256xf32>
    %cst_40 = arith.constant dense<0.000000e+00> : vector<2xf32>
    %112 = vector.multi_reduction <add>, %111, %cst_40 [1] : vector<2x256xf32> to vector<2xf32>
    %113 = vector.shape_cast %112 : vector<2xf32> to vector<2x1xf32>
    %cst_41 = arith.constant 2.560000e+02 : f32
    %114 = vector.broadcast %cst_41 : f32 to vector<2x1xf32>
    %115 = arith.divf %113, %114 : vector<2x1xf32>
    %116 = vector.broadcast %115 : vector<2x1xf32> to vector<2x256xf32>
    %117 = arith.subf %111, %116 : vector<2x256xf32>
    %118 = arith.mulf %117, %117 : vector<2x256xf32>
    %cst_42 = arith.constant dense<0.000000e+00> : vector<2xf32>
    %119 = vector.multi_reduction <add>, %118, %cst_42 [1] : vector<2x256xf32> to vector<2xf32>
    %120 = vector.shape_cast %119 : vector<2xf32> to vector<2x1xf32>
    %cst_43 = arith.constant 2.560000e+02 : f32
    %121 = vector.broadcast %cst_43 : f32 to vector<2x1xf32>
    %122 = arith.divf %120, %121 : vector<2x1xf32>
    %cst_44 = arith.constant 9.99999974E-6 : f32
    %123 = vector.broadcast %cst_44 : f32 to vector<2x1xf32>
    %124 = arith.addf %122, %123 : vector<2x1xf32>
    %125 = math.rsqrt %124 : vector<2x1xf32>
    %126 = vector.broadcast %125 : vector<2x1xf32> to vector<2x256xf32>
    %127 = arith.mulf %117, %126 : vector<2x256xf32>
    %c0_45 = arith.constant 0 : index
    %c1536 = arith.constant 1536 : index
    %128 = vector.load %arg2[%c0_45, %c1536] : memref<2x2048xf32, #tpu.memory_space<vmem>>, vector<2x256xf32>
    tpu.vector_store %arg2[%c0_45, %c1536], %127 {strides = array<i32>} : memref<2x2048xf32, #tpu.memory_space<vmem>>, vector<2x256xf32>,
    %129 = vector.extract_strided_slice %2 {offsets = [0, 1792], sizes = [2, 256], strides = [1, 1]} : vector<2x2048xf32> to vector<2x256xf32>
    %cst_46 = arith.constant dense<0.000000e+00> : vector<2xf32>
    %130 = vector.multi_reduction <add>, %129, %cst_46 [1] : vector<2x256xf32> to vector<2xf32>
    %131 = vector.shape_cast %130 : vector<2xf32> to vector<2x1xf32>
    %cst_47 = arith.constant 2.560000e+02 : f32
    %132 = vector.broadcast %cst_47 : f32 to vector<2x1xf32>
    %133 = arith.divf %131, %132 : vector<2x1xf32>
    %134 = vector.broadcast %133 : vector<2x1xf32> to vector<2x256xf32>
    %135 = arith.subf %129, %134 : vector<2x256xf32>
    %136 = arith.mulf %135, %135 : vector<2x256xf32>
    %cst_48 = arith.constant dense<0.000000e+00> : vector<2xf32>
    %137 = vector.multi_reduction <add>, %136, %cst_48 [1] : vector<2x256xf32> to vector<2xf32>
    %138 = vector.shape_cast %137 : vector<2xf32> to vector<2x1xf32>
    %cst_49 = arith.constant 2.560000e+02 : f32
    %139 = vector.broadcast %cst_49 : f32 to vector<2x1xf32>
    %140 = arith.divf %138, %139 : vector<2x1xf32>
    %cst_50 = arith.constant 9.99999974E-6 : f32
    %141 = vector.broadcast %cst_50 : f32 to vector<2x1xf32>
    %142 = arith.addf %140, %141 : vector<2x1xf32>
    %143 = math.rsqrt %142 : vector<2x1xf32>
    %144 = vector.broadcast %143 : vector<2x1xf32> to vector<2x256xf32>
    %145 = arith.mulf %135, %144 : vector<2x256xf32>
    %c0_51 = arith.constant 0 : index
    %c1792 = arith.constant 1792 : index
    %146 = vector.load %arg2[%c0_51, %c1792] : memref<2x2048xf32, #tpu.memory_space<vmem>>, vector<2x256xf32>
    tpu.vector_store %arg2[%c0_51, %c1792], %145 {strides = array<i32>} : memref<2x2048xf32, #tpu.memory_space<vmem>>, vector<2x256xf32>,
    return
  }
}

</mosaic_0001>

<bundles_post_ra>
// kernel: decoder_layer_forward.1
= control target key start
LH: loop header
LB: loop body
LE: loop exit
PB: predicated region body
PF: predicated region fallthrough
CT: control target
= control target key end

     0   :  { %v2445_v35 = vmov 1966171168   ;;  %v280_v37 = vlaneseq  ;;  %vm1901_vm0 = vcmask 1041408   ;;  %s3445_s1 = inlined_call_operand.vmem [shape: bf16[256,2048], index: 1, kind: input, shape index: {}]   ;;  %s3446_s0 = inlined_call_operand.vmem [shape: bf16[2,256], index: 0, kind: input, shape index: {}]   ;;  %s3447_s2 = inlined_call_operand.vmem [shape: f32[2,2048], index: 2, kind: output, shape index: {}]  }
   0x1   :  { %v12_v0 = vld [vmem:[%s3445_s1] sm:$0xff]  ;;  %v13_v2 = vld [vmem:[%s3445_s1 + $0x8] sm:$0xff]  ;;  %v278_v36 = vunpack.c.l.s4 %v2445_v35 }
   0x2   :  { %v20_v1 = vld [vmem:[%s3445_s1 + $0x40] sm:$0xff]  ;;  %v21_v4 = vld [vmem:[%s3445_s1 + $0x48] sm:$0xff]  ;;  %v281_v47 = vshrl.u32 %v280_v37, 7 }
   0x3   :  { %v2165_v3 = vcombine.high %v12_v0, %v20_v1  ;;  %v2164_v5 = vcombine.low %v12_v0, %v20_v1  ;;  %v28_v6 = vld [vmem:[%s3445_s1 + $0x80] sm:$0xff]  ;;  %v2167_v8 = vcombine.high %v13_v2, %v21_v4  ;;  %v2166_v9 = vcombine.low %v13_v2, %v21_v4  ;;  %v29_v11 = vld [vmem:[%s3445_s1 + $0x88] sm:$0xff] }
   0x4   :  { %v36_v7 = vld [vmem:[%s3445_s1 + $0xc0] sm:$0xff]  ;;  %v37_v12 = vld [vmem:[%s3445_s1 + $0xc8] sm:$0xff]  ;;  %v279_v46 = vunpack.c.0.s8 %v278_v36 }
   0x5   :  { %v2181_v10 = vcombine.high %v28_v6, %v36_v7  ;;  %v44_v13 = vld [vmem:[%s3445_s1 + $0x100] sm:$0xff]  ;;  %1573 = vmatprep.subr.bf16.mxu0 %v2165_v3  ;;  %v2183_v14 = vcombine.high %v29_v11, %v37_v12  ;;  %v45_v16 = vld [vmem:[%s3445_s1 + $0x108] sm:$0xff]  ;;  %1614 = vmatprep.subr.bf16.mxu1 %v2167_v8  ;;  %v2180_v18 = vcombine.low %v28_v6, %v36_v7 }
   0x6   :  { %v52_v15 = vld [vmem:[%s3445_s1 + $0x140] sm:$0xff]  ;;  %v53_v17 = vld [vmem:[%s3445_s1 + $0x148] sm:$0xff]  ;;  %1574 = vmatpush1.bf16.msra.mxu0 %v2164_v5  ;;  %1615 = vmatpush1.bf16.msra.mxu1 %v2166_v9  ;;  %v2182_v19 = vcombine.low %v29_v11, %v37_v12  ;;  %v2545_v56 = vsub.s32 %v279_v46, %v281_v47 }
   0x7   :  { %1575 = vmatprep.subr.bf16.mxu0 %v2181_v10  ;;  %v2197_v20 = vcombine.high %v44_v13, %v52_v15  ;;  %1616 = vmatprep.subr.bf16.mxu1 %v2183_v14  ;;  %v2199_v21 = vcombine.high %v45_v16, %v53_v17  ;;  %v60_v22 = vld [vmem:[%s3445_s1 + $0x180] sm:$0xff]  ;;  %v61_v24 = vld [vmem:[%s3445_s1 + $0x188] sm:$0xff]  ;;  %v2196_v26 = vcombine.low %v44_v13, %v52_v15 }
   0x8   :  { %v68_v23 = vld [vmem:[%s3445_s1 + $0x1c0] sm:$0xff]  ;;  %v69_v25 = vld [vmem:[%s3445_s1 + $0x1c8] sm:$0xff]  ;;  %v2198_v27 = vcombine.low %v45_v16, %v53_v17 }
   0x9   :  { %v2213_v28 = vcombine.high %v60_v22, %v68_v23  ;;  %v2215_v29 = vcombine.high %v61_v24, %v69_v25  ;;  %v76_v30 = vld [vmem:[%s3445_s1 + $0x200] sm:$0xff]  ;;  %v77_v32 = vld [vmem:[%s3445_s1 + $0x208] sm:$0xff]  ;;  %v2212_v34 = vcombine.low %v60_v22, %v68_v23  ;;  %v2214_v38 = vcombine.low %v61_v24, %v69_v25 }
   0xa   :  { %1576 = vmatpush1.bf16.msra.mxu0 %v2180_v18  ;;  %1617 = vmatpush1.bf16.msra.mxu1 %v2182_v19  ;;  %v84_v31 = vld [vmem:[%s3445_s1 + $0x240] sm:$0xff]  ;;  %v85_v33 = vld [vmem:[%s3445_s1 + $0x248] sm:$0xff] }
   0xb   :  { %1577 = vmatprep.subr.bf16.mxu0 %v2197_v20  ;;  %1618 = vmatprep.subr.bf16.mxu1 %v2199_v21  ;;  %v2229_v39 = vcombine.high %v76_v30, %v84_v31  ;;  %v2231_v40 = vcombine.high %v77_v32, %v85_v33  ;;  %v92_v41 = vld [vmem:[%s3445_s1 + $0x280] sm:$0xff]  ;;  %v93_v43 = vld [vmem:[%s3445_s1 + $0x288] sm:$0xff]  ;;  %v2228_v45 = vcombine.low %v76_v30, %v84_v31 }
   0xc   :  { %v100_v42 = vld [vmem:[%s3445_s1 + $0x2c0] sm:$0xff]  ;;  %v101_v44 = vld [vmem:[%s3445_s1 + $0x2c8] sm:$0xff]  ;;  %v2230_v48 = vcombine.low %v77_v32, %v85_v33 }
   0xd   :  { %v2245_v49 = vcombine.high %v92_v41, %v100_v42  ;;  %v2247_v50 = vcombine.high %v93_v43, %v101_v44  ;;  %v108_v51 = vld [vmem:[%s3445_s1 + $0x300] sm:$0xff]  ;;  %v109_v53 = vld [vmem:[%s3445_s1 + $0x308] sm:$0xff]  ;;  %v2244_v55 = vcombine.low %v92_v41, %v100_v42  ;;  %v2246_v57 = vcombine.low %v93_v43, %v101_v44 }
   0xe   :  { %1578 = vmatpush1.bf16.msra.mxu0 %v2196_v26  ;;  %1619 = vmatpush1.bf16.msra.mxu1 %v2198_v27  ;;  %v116_v52 = vld [vmem:[%s3445_s1 + $0x340] sm:$0xff]  ;;  %v117_v54 = vld [vmem:[%s3445_s1 + $0x348] sm:$0xff] }
   0xf   :  { %1579 = vmatprep.subr.bf16.mxu0 %v2213_v28  ;;  %1620 = vmatprep.subr.bf16.mxu1 %v2215_v29  ;;  %v2261_v58 = vcombine.high %v108_v51, %v116_v52  ;;  %v2550_v59 = vld.sshfl [vmem:[%s3446_s0] sm:$0x11 pattern:$0x75316420]  ;;  %v2263_v60 = vcombine.high %v109_v53, %v117_v54  ;;  %v125_v0 = vld [vmem:[%s3445_s1 + $0x388] sm:$0xff]  ;;  %v2260_v2 = vcombine.low %v108_v51, %v116_v52 }
  0x10   :  { %v124_v61 = vld [vmem:[%s3445_s1 + $0x380] sm:$0xff]  ;;  %v276_v63 = vcombine.high %v2550_v59, %v2550_v59  ;;  %v133_v1 = vld [vmem:[%s3445_s1 + $0x3c8] sm:$0xff]  ;;  %v2262_v4 = vcombine.low %v109_v53, %v117_v54 }
  0x11   :  { %v132_v62 = vld [vmem:[%s3445_s1 + $0x3c0] sm:$0xff]  ;;  %v2279_v6 = vcombine.high %v125_v0, %v133_v1  ;;  %v141_v9 = vld [vmem:[%s3445_s1 + $0x408] sm:$0xff]  ;;  %v2278_v12 = vcombine.low %v125_v0, %v133_v1 }
  0x12   :  { %1580 = vmatpush1.bf16.msra.mxu0 %v2212_v34  ;;  %1621 = vmatpush1.bf16.msra.mxu1 %v2214_v38  ;;  %v2567_v3 = vrot.slane %v276_v63, %v2545_v56  ;;  %v2277_v5 = vcombine.high %v124_v61, %v132_v62  ;;  %v140_v7 = vld [vmem:[%s3445_s1 + $0x400] sm:$0xff]  ;;  %v149_v10 = vld [vmem:[%s3445_s1 + $0x448] sm:$0xff]  ;;  %v2276_v11 = vcombine.low %v124_v61, %v132_v62 }
  0x13   :  { %1581 = vmatprep.subr.bf16.mxu0 %v2229_v39  ;;  %1622 = vmatprep.subr.bf16.mxu1 %v2231_v40  ;;  %v148_v8 = vld [vmem:[%s3445_s1 + $0x440] sm:$0xff]  ;;  %v2295_v14 = vcombine.high %v141_v9, %v149_v10  ;;  %v157_v17 = vld [vmem:[%s3445_s1 + $0x488] sm:$0xff]  ;;  %v2294_v20 = vcombine.low %v141_v9, %v149_v10  ;;  %v14_v10 = vld [vmem:[%s3445_s1 + $0x10] sm:$0xff] }
  0x14   :  { %1605 = vmatprep.mubr.bf16.mxu0 %v2567_v3  ;;  %1646 = vmatprep.mubr.bf16.mxu1 %v2567_v3  ;;  %v2293_v13 = vcombine.high %v140_v7, %v148_v8  ;;  %v156_v15 = vld [vmem:[%s3445_s1 + $0x480] sm:$0xff]  ;;  %v165_v18 = vld [vmem:[%s3445_s1 + $0x4c8] sm:$0xff]  ;;  %v2292_v19 = vcombine.low %v140_v7, %v148_v8 }
  0x15   :  { %v164_v16 = vld [vmem:[%s3445_s1 + $0x4c0] sm:$0xff]  ;;  %v2311_v22 = vcombine.high %v157_v17, %v165_v18  ;;  %v173_v25 = vld [vmem:[%s3445_s1 + $0x508] sm:$0xff]  ;;  %v2310_v28 = vcombine.low %v157_v17, %v165_v18  ;;  %v30_v18 = vld [vmem:[%s3445_s1 + $0x90] sm:$0xff] }
  0x16   :  { %1582 = vmatpush1.bf16.msra.mxu0 %v2228_v45  ;;  %1623 = vmatpush1.bf16.msra.mxu1 %v2230_v48  ;;  %v2309_v21 = vcombine.high %v156_v15, %v164_v16  ;;  %v172_v23 = vld [vmem:[%s3445_s1 + $0x500] sm:$0xff]  ;;  %v181_v26 = vld [vmem:[%s3445_s1 + $0x548] sm:$0xff]  ;;  %v2308_v27 = vcombine.low %v156_v15, %v164_v16 }
  0x17   :  { %1583 = vmatprep.subr.bf16.mxu0 %v2245_v49  ;;  %1624 = vmatprep.subr.bf16.mxu1 %v2247_v50  ;;  %v180_v24 = vld [vmem:[%s3445_s1 + $0x540] sm:$0xff]  ;;  %v2327_v30 = vcombine.high %v173_v25, %v181_v26  ;;  %v189_v33 = vld [vmem:[%s3445_s1 + $0x588] sm:$0xff]  ;;  %v2326_v36 = vcombine.low %v173_v25, %v181_v26 }
  0x18   :  { %v2325_v29 = vcombine.high %v172_v23, %v180_v24  ;;  %v188_v31 = vld [vmem:[%s3445_s1 + $0x580] sm:$0xff]  ;;  %v197_v34 = vld [vmem:[%s3445_s1 + $0x5c8] sm:$0xff]  ;;  %v2324_v35 = vcombine.low %v172_v23, %v180_v24 }
  0x19   :  { %v196_v32 = vld [vmem:[%s3445_s1 + $0x5c0] sm:$0xff]  ;;  %v2343_v38 = vcombine.high %v189_v33, %v197_v34  ;;  %v205_v41 = vld [vmem:[%s3445_s1 + $0x608] sm:$0xff]  ;;  %v2342_v44 = vcombine.low %v189_v33, %v197_v34  ;;  %v62_v33 = vld [vmem:[%s3445_s1 + $0x190] sm:$0xff] }
  0x1a   :  { %1584 = vmatpush1.bf16.msra.mxu0 %v2244_v55  ;;  %1625 = vmatpush1.bf16.msra.mxu1 %v2246_v57  ;;  %v2341_v37 = vcombine.high %v188_v31, %v196_v32  ;;  %v204_v39 = vld [vmem:[%s3445_s1 + $0x600] sm:$0xff]  ;;  %v213_v42 = vld [vmem:[%s3445_s1 + $0x648] sm:$0xff]  ;;  %v2340_v43 = vcombine.low %v188_v31, %v196_v32  ;;  %v70_v34 = vld [vmem:[%s3445_s1 + $0x1d0] sm:$0xff] }
  0x1b   :  { %1585 = vmatprep.subr.bf16.mxu0 %v2261_v58  ;;  %1626 = vmatprep.subr.bf16.mxu1 %v2263_v60  ;;  %v212_v40 = vld [vmem:[%s3445_s1 + $0x640] sm:$0xff]  ;;  %v2359_v46 = vcombine.high %v205_v41, %v213_v42  ;;  %v221_v49 = vld [vmem:[%s3445_s1 + $0x688] sm:$0xff]  ;;  %v2358_v52 = vcombine.low %v205_v41, %v213_v42  ;;  %v78_v41 = vld [vmem:[%s3445_s1 + $0x210] sm:$0xff] }
  0x1c   :  { %v2357_v45 = vcombine.high %v204_v39, %v212_v40  ;;  %v220_v47 = vld [vmem:[%s3445_s1 + $0x680] sm:$0xff]  ;;  %v229_v50 = vld [vmem:[%s3445_s1 + $0x6c8] sm:$0xff]  ;;  %v2356_v51 = vcombine.low %v204_v39, %v212_v40  ;;  %v2217_v39 = vcombine.high %v62_v33, %v70_v34  ;;  %v86_v42 = vld [vmem:[%s3445_s1 + $0x250] sm:$0xff] }
  0x1d   :  { %v228_v48 = vld [vmem:[%s3445_s1 + $0x6c0] sm:$0xff]  ;;  %v2375_v54 = vcombine.high %v221_v49, %v229_v50  ;;  %v237_v58 = vld [vmem:[%s3445_s1 + $0x708] sm:$0xff]  ;;  %v2374_v62 = vcombine.low %v221_v49, %v229_v50  ;;  %v94_v49 = vld [vmem:[%s3445_s1 + $0x290] sm:$0xff] }
  0x1e   :  { %1586 = vmatpush1.bf16.msra.mxu0 %v2260_v2  ;;  %1627 = vmatpush1.bf16.msra.mxu1 %v2262_v4  ;;  %v2373_v53 = vcombine.high %v220_v47, %v228_v48  ;;  %v236_v55 = vld [vmem:[%s3445_s1 + $0x700] sm:$0xff]  ;;  %v245_v60 = vld [vmem:[%s3445_s1 + $0x748] sm:$0xff]  ;;  %v2372_v61 = vcombine.low %v220_v47, %v228_v48  ;;  %v2233_v47 = vcombine.high %v78_v41, %v86_v42  ;;  %v102_v50 = vld [vmem:[%s3445_s1 + $0x2d0] sm:$0xff] }
  0x1f   :  { %1587 = vmatprep.subr.bf16.mxu0 %v2277_v5  ;;  %1628 = vmatprep.subr.bf16.mxu1 %v2279_v6  ;;  %v244_v57 = vld [vmem:[%s3445_s1 + $0x740] sm:$0xff]  ;;  %v2391_v0 = vcombine.high %v237_v58, %v245_v60  ;;  %v253_v4 = vld [vmem:[%s3445_s1 + $0x788] sm:$0xff]  ;;  %v2390_v7 = vcombine.low %v237_v58, %v245_v60  ;;  %v110_v58 = vld [vmem:[%s3445_s1 + $0x310] sm:$0xff] }
  0x20   :  { %v2389_v63 = vcombine.high %v236_v55, %v244_v57  ;;  %v252_v1 = vld [vmem:[%s3445_s1 + $0x780] sm:$0xff]  ;;  %v261_v5 = vld [vmem:[%s3445_s1 + $0x7c8] sm:$0xff]  ;;  %v2388_v6 = vcombine.low %v236_v55, %v244_v57  ;;  %v2249_v55 = vcombine.high %v94_v49, %v102_v50  ;;  %v118_v60 = vld [vmem:[%s3445_s1 + $0x350] sm:$0xff] }
  0x21   :  { %v260_v2 = vld [vmem:[%s3445_s1 + $0x7c0] sm:$0xff]  ;;  %v2407_v9 = vcombine.high %v253_v4, %v261_v5  ;;  %v2406_v15 = vcombine.low %v253_v4, %v261_v5  ;;  %v126_v4 = vld [vmem:[%s3445_s1 + $0x390] sm:$0xff] }
  0x22   :  { %1588 = vmatpush1.bf16.msra.mxu0 %v2276_v11  ;;  %1629 = vmatpush1.bf16.msra.mxu1 %v2278_v12  ;;  %v2405_v8 = vcombine.high %v252_v1, %v260_v2  ;;  %v22_v11 = vld [vmem:[%s3445_s1 + $0x50] sm:$0xff]  ;;  %v15_v12 = vld [vmem:[%s3445_s1 + $0x18] sm:$0xff] }
  0x23   :  { %1589 = vmatprep.subr.bf16.mxu0 %v2293_v13  ;;  %1630 = vmatprep.subr.bf16.mxu1 %v2295_v14  ;;  %v23_v13 = vld [vmem:[%s3445_s1 + $0x58] sm:$0xff]  ;;  %v2404_v14 = vcombine.low %v252_v1, %v260_v2  ;;  %v2169_v16 = vcombine.high %v14_v10, %v22_v11  ;;  %v2168_v23 = vcombine.low %v14_v10, %v22_v11  ;;  %v134_v5 = vld [vmem:[%s3445_s1 + $0x3d0] sm:$0xff] }
  0x24   :  { %v2171_v17 = vcombine.high %v15_v12, %v23_v13  ;;  %v2170_v24 = vcombine.low %v15_v12, %v23_v13  ;;  %v2265_v1 = vcombine.high %v110_v58, %v118_v60  ;;  %v2281_v10 = vcombine.high %v126_v4, %v134_v5  ;;  %v142_v12 = vld [vmem:[%s3445_s1 + $0x410] sm:$0xff] }
  0x25   :  { %v150_v13 = vld [vmem:[%s3445_s1 + $0x450] sm:$0xff] }
  0x26   :  { %1590 = vmatpush1.bf16.msra.mxu0 %v2292_v19  ;;  %1631 = vmatpush1.bf16.msra.mxu1 %v2294_v20  ;;  %v38_v19 = vld [vmem:[%s3445_s1 + $0xd0] sm:$0xff]  ;;  %v2687_v20 = vrot.slane %v2550_v59, %v2545_v56 }
  0x27   :  { %1591 = vmatprep.subr.bf16.mxu0 %v2309_v21  ;;  %1632 = vmatprep.subr.bf16.mxu1 %v2311_v22  ;;  %v31_v21 = vld [vmem:[%s3445_s1 + $0x98] sm:$0xff]  ;;  %v2185_v25 = vcombine.high %v30_v18, %v38_v19  ;;  %v46_v56 = vld [vmem:[%s3445_s1 + $0x110] sm:$0xff] }
  0x28   :  { %v39_v22 = vld [vmem:[%s3445_s1 + $0xd8] sm:$0xff]  ;;  %v54_v59 = vld [vmem:[%s3445_s1 + $0x150] sm:$0xff] }
  0x29   :  { %v2187_v26 = vcombine.high %v31_v21, %v39_v22  ;;  %v2201_v31 = vcombine.high %v46_v56, %v54_v59 }
  0x2a   :  { %1592 = vmatpush1.bf16.msra.mxu0 %v2308_v27  ;;  %1633 = vmatpush1.bf16.msra.mxu1 %v2310_v28  ;;  %v47_v27 = vld [vmem:[%s3445_s1 + $0x118] sm:$0xff] }
  0x2b   :  { %1593 = vmatprep.subr.bf16.mxu0 %v2325_v29  ;;  %1634 = vmatprep.subr.bf16.mxu1 %v2327_v30  ;;  %v55_v28 = vld [vmem:[%s3445_s1 + $0x158] sm:$0xff]  ;;  %v2184_v29 = vcombine.low %v30_v18, %v38_v19  ;;  %v2186_v30 = vcombine.low %v31_v21, %v39_v22  ;;  %v2297_v18 = vcombine.high %v142_v12, %v150_v13  ;;  %v158_v21 = vld [vmem:[%s3445_s1 + $0x490] sm:$0xff] }
  0x2c   :  { %v2203_v32 = vcombine.high %v47_v27, %v55_v28  ;;  %v166_v22 = vld [vmem:[%s3445_s1 + $0x4d0] sm:$0xff] }
  0x2e   :  { %1594 = vmatpush1.bf16.msra.mxu0 %v2324_v35  ;;  %1635 = vmatpush1.bf16.msra.mxu1 %v2326_v36  ;;  %v63_v35 = vld [vmem:[%s3445_s1 + $0x198] sm:$0xff] }
  0x2f   :  { %1595 = vmatprep.subr.bf16.mxu0 %v2341_v37  ;;  %1636 = vmatprep.subr.bf16.mxu1 %v2343_v38  ;;  %v71_v36 = vld [vmem:[%s3445_s1 + $0x1d8] sm:$0xff]  ;;  %v2200_v37 = vcombine.low %v46_v56, %v54_v59  ;;  %v2202_v38 = vcombine.low %v47_v27, %v55_v28  ;;  %v2313_v56 = vcombine.high %v158_v21, %v166_v22  ;;  %v174_v27 = vld [vmem:[%s3445_s1 + $0x510] sm:$0xff] }
  0x30   :  { %v2219_v40 = vcombine.high %v63_v35, %v71_v36  ;;  %v182_v28 = vld [vmem:[%s3445_s1 + $0x550] sm:$0xff] }
  0x32   :  { %1596 = vmatpush1.bf16.msra.mxu0 %v2340_v43  ;;  %1637 = vmatpush1.bf16.msra.mxu1 %v2342_v44  ;;  %v79_v43 = vld [vmem:[%s3445_s1 + $0x218] sm:$0xff] }
  0x33   :  { %1597 = vmatprep.subr.bf16.mxu0 %v2357_v45  ;;  %1638 = vmatprep.subr.bf16.mxu1 %v2359_v46  ;;  %v87_v44 = vld [vmem:[%s3445_s1 + $0x258] sm:$0xff]  ;;  %v2216_v45 = vcombine.low %v62_v33, %v70_v34  ;;  %v2218_v46 = vcombine.low %v63_v35, %v71_v36  ;;  %v2329_v33 = vcombine.high %v174_v27, %v182_v28  ;;  %v190_v35 = vld [vmem:[%s3445_s1 + $0x590] sm:$0xff] }
  0x34   :  { %v2235_v48 = vcombine.high %v79_v43, %v87_v44  ;;  %v198_v36 = vld [vmem:[%s3445_s1 + $0x5d0] sm:$0xff] }
  0x36   :  { %1598 = vmatpush1.bf16.msra.mxu0 %v2356_v51  ;;  %1639 = vmatpush1.bf16.msra.mxu1 %v2358_v52  ;;  %v95_v51 = vld [vmem:[%s3445_s1 + $0x298] sm:$0xff] }
  0x37   :  { %1599 = vmatprep.subr.bf16.mxu0 %v2373_v53  ;;  %1640 = vmatprep.subr.bf16.mxu1 %v2375_v54  ;;  %v103_v52 = vld [vmem:[%s3445_s1 + $0x2d8] sm:$0xff]  ;;  %v2232_v53 = vcombine.low %v78_v41, %v86_v42  ;;  %v2234_v54 = vcombine.low %v79_v43, %v87_v44  ;;  %v2345_v41 = vcombine.high %v190_v35, %v198_v36  ;;  %v206_v43 = vld [vmem:[%s3445_s1 + $0x610] sm:$0xff] }
  0x38   :  { %v2251_v57 = vcombine.high %v95_v51, %v103_v52  ;;  %v214_v44 = vld [vmem:[%s3445_s1 + $0x650] sm:$0xff] }
  0x3a   :  { %1600 = vmatpush1.bf16.msra.mxu0 %v2372_v61  ;;  %1641 = vmatpush1.bf16.msra.mxu1 %v2374_v62  ;;  %v111_v61 = vld [vmem:[%s3445_s1 + $0x318] sm:$0xff] }
  0x3b   :  { %1601 = vmatprep.subr.bf16.mxu0 %v2389_v63  ;;  %1642 = vmatprep.subr.bf16.mxu1 %v2391_v0  ;;  %v119_v62 = vld [vmem:[%s3445_s1 + $0x358] sm:$0xff]  ;;  %v2248_v63 = vcombine.low %v94_v49, %v102_v50  ;;  %v2250_v0 = vcombine.low %v95_v51, %v103_v52  ;;  %v2361_v49 = vcombine.high %v206_v43, %v214_v44  ;;  %v222_v51 = vld [vmem:[%s3445_s1 + $0x690] sm:$0xff] }
  0x3c   :  { %v2267_v2 = vcombine.high %v111_v61, %v119_v62  ;;  %v230_v52 = vld [vmem:[%s3445_s1 + $0x6d0] sm:$0xff] }
  0x3e   :  { %1602 = vmatpush1.bf16.msra.mxu0 %v2388_v6  ;;  %1643 = vmatpush1.bf16.msra.mxu1 %v2390_v7  ;;  %v127_v6 = vld [vmem:[%s3445_s1 + $0x398] sm:$0xff] }
  0x3f   :  { %1603 = vmatprep.subr.bf16.mxu0 %v2405_v8  ;;  %1644 = vmatprep.subr.bf16.mxu1 %v2407_v9  ;;  %v135_v7 = vld [vmem:[%s3445_s1 + $0x3d8] sm:$0xff]  ;;  %v2264_v8 = vcombine.low %v110_v58, %v118_v60  ;;  %v2266_v9 = vcombine.low %v111_v61, %v119_v62  ;;  %v2377_v58 = vcombine.high %v222_v51, %v230_v52  ;;  %v238_v61 = vld [vmem:[%s3445_s1 + $0x710] sm:$0xff] }
  0x40   :  { %v2283_v11 = vcombine.high %v127_v6, %v135_v7  ;;  %v246_v62 = vld [vmem:[%s3445_s1 + $0x750] sm:$0xff] }
  0x42   :  { %1604 = vmatpush1.bf16.msra.mxu0 %v2404_v14  ;;  %1645 = vmatpush1.bf16.msra.mxu1 %v2406_v15  ;;  %v143_v14 = vld [vmem:[%s3445_s1 + $0x418] sm:$0xff] }
  0x43   :  { %1655 = vmatprep.subr.bf16.mxu0 %v2169_v16  ;;  %1696 = vmatprep.subr.bf16.mxu1 %v2171_v17  ;;  %v151_v15 = vld [vmem:[%s3445_s1 + $0x458] sm:$0xff]  ;;  %v2280_v16 = vcombine.low %v126_v4, %v134_v5  ;;  %v2282_v17 = vcombine.low %v127_v6, %v135_v7  ;;  %v2393_v4 = vcombine.high %v238_v61, %v246_v62  ;;  %v254_v6 = vld [vmem:[%s3445_s1 + $0x790] sm:$0xff] }
  0x44   :  { %v2299_v19 = vcombine.high %v143_v14, %v151_v15  ;;  %v262_v7 = vld [vmem:[%s3445_s1 + $0x7d0] sm:$0xff] }
  0x45   :  { %1606 = vmatmul.mubr.bf16.vlgmr.msra.gmra.mrb[0].mxu0 %v2687_v20  ;;  %1647 = vmatmul.mubr.bf16.vlgmr.msra.gmra.mrb[0].mxu1 %v2687_v20 }
  0x46   :  { %1656 = vmatpush1.bf16.msra.mxu0 %v2168_v23  ;;  %1697 = vmatpush1.bf16.msra.mxu1 %v2170_v24  ;;  %v159_v23 = vld [vmem:[%s3445_s1 + $0x498] sm:$0xff] }
  0x47   :  { %1657 = vmatprep.subr.bf16.mxu0 %v2185_v25  ;;  %1698 = vmatprep.subr.bf16.mxu1 %v2187_v26  ;;  %v167_v24 = vld [vmem:[%s3445_s1 + $0x4d8] sm:$0xff]  ;;  %v2296_v25 = vcombine.low %v142_v12, %v150_v13  ;;  %v2298_v26 = vcombine.low %v143_v14, %v151_v15  ;;  %v2409_v12 = vcombine.high %v254_v6, %v262_v7  ;;  %v16_v14 = vld [vmem:[%s3445_s1 + $0x20] sm:$0xff] }
  0x48   :  { %1687 = vmatprep.mubr.bf16.mxu0 %v2567_v3  ;;  %1728 = vmatprep.mubr.bf16.mxu1 %v2567_v3  ;;  %v2315_v59 = vcombine.high %v159_v23, %v167_v24  ;;  %v24_v15 = vld [vmem:[%s3445_s1 + $0x60] sm:$0xff] }
  0x4a   :  { %1658 = vmatpush1.bf16.msra.mxu0 %v2184_v29  ;;  %1699 = vmatpush1.bf16.msra.mxu1 %v2186_v30  ;;  %v175_v29 = vld [vmem:[%s3445_s1 + $0x518] sm:$0xff] }
  0x4b   :  { %1659 = vmatprep.subr.bf16.mxu0 %v2201_v31  ;;  %1700 = vmatprep.subr.bf16.mxu1 %v2203_v32  ;;  %v183_v30 = vld [vmem:[%s3445_s1 + $0x558] sm:$0xff]  ;;  %v2312_v31 = vcombine.low %v158_v21, %v166_v22  ;;  %v2314_v32 = vcombine.low %v159_v23, %v167_v24  ;;  %v2173_v21 = vcombine.high %v16_v14, %v24_v15  ;;  %v32_v23 = vld [vmem:[%s3445_s1 + $0xa0] sm:$0xff] }
  0x4c   :  { %v2331_v34 = vcombine.high %v175_v29, %v183_v30  ;;  %v40_v24 = vld [vmem:[%s3445_s1 + $0xe0] sm:$0xff] }
  0x4e   :  { %1660 = vmatpush1.bf16.msra.mxu0 %v2200_v37  ;;  %1701 = vmatpush1.bf16.msra.mxu1 %v2202_v38  ;;  %v191_v37 = vld [vmem:[%s3445_s1 + $0x598] sm:$0xff] }
  0x4f   :  { %1661 = vmatprep.subr.bf16.mxu0 %v2217_v39  ;;  %1702 = vmatprep.subr.bf16.mxu1 %v2219_v40  ;;  %v199_v38 = vld [vmem:[%s3445_s1 + $0x5d8] sm:$0xff]  ;;  %v2328_v39 = vcombine.low %v174_v27, %v182_v28  ;;  %v2330_v40 = vcombine.low %v175_v29, %v183_v30  ;;  %v2189_v27 = vcombine.high %v32_v23, %v40_v24  ;;  %v48_v29 = vld [vmem:[%s3445_s1 + $0x120] sm:$0xff] }
  0x50   :  { %v2347_v42 = vcombine.high %v191_v37, %v199_v38  ;;  %v56_v30 = vld [vmem:[%s3445_s1 + $0x160] sm:$0xff] }
  0x52   :  { %1662 = vmatpush1.bf16.msra.mxu0 %v2216_v45  ;;  %1703 = vmatpush1.bf16.msra.mxu1 %v2218_v46  ;;  %v207_v45 = vld [vmem:[%s3445_s1 + $0x618] sm:$0xff] }
  0x53   :  { %1663 = vmatprep.subr.bf16.mxu0 %v2233_v47  ;;  %1704 = vmatprep.subr.bf16.mxu1 %v2235_v48  ;;  %v215_v46 = vld [vmem:[%s3445_s1 + $0x658] sm:$0xff]  ;;  %v2344_v47 = vcombine.low %v190_v35, %v198_v36  ;;  %v2346_v48 = vcombine.low %v191_v37, %v199_v38  ;;  %v2205_v35 = vcombine.high %v48_v29, %v56_v30  ;;  %v64_v37 = vld [vmem:[%s3445_s1 + $0x1a0] sm:$0xff] }
  0x54   :  { %v2363_v50 = vcombine.high %v207_v45, %v215_v46  ;;  %v72_v38 = vld [vmem:[%s3445_s1 + $0x1e0] sm:$0xff] }
  0x56   :  { %1664 = vmatpush1.bf16.msra.mxu0 %v2232_v53  ;;  %1705 = vmatpush1.bf16.msra.mxu1 %v2234_v54  ;;  %v223_v53 = vld [vmem:[%s3445_s1 + $0x698] sm:$0xff] }
  0x57   :  { %1665 = vmatprep.subr.bf16.mxu0 %v2249_v55  ;;  %1706 = vmatprep.subr.bf16.mxu1 %v2251_v57  ;;  %v231_v54 = vld [vmem:[%s3445_s1 + $0x6d8] sm:$0xff]  ;;  %v2360_v55 = vcombine.low %v206_v43, %v214_v44  ;;  %v2362_v57 = vcombine.low %v207_v45, %v215_v46  ;;  %v2221_v43 = vcombine.high %v64_v37, %v72_v38  ;;  %v80_v45 = vld [vmem:[%s3445_s1 + $0x220] sm:$0xff] }
  0x58   :  { %v2379_v60 = vcombine.high %v223_v53, %v231_v54  ;;  %v88_v46 = vld [vmem:[%s3445_s1 + $0x260] sm:$0xff] }
  0x5a   :  { %1666 = vmatpush1.bf16.msra.mxu0 %v2248_v63  ;;  %1707 = vmatpush1.bf16.msra.mxu1 %v2250_v0  ;;  %v239_v63 = vld [vmem:[%s3445_s1 + $0x718] sm:$0xff] }
  0x5b   :  { %1667 = vmatprep.subr.bf16.mxu0 %v2265_v1  ;;  %1708 = vmatprep.subr.bf16.mxu1 %v2267_v2  ;;  %v247_v0 = vld [vmem:[%s3445_s1 + $0x758] sm:$0xff]  ;;  %v2376_v1 = vcombine.low %v222_v51, %v230_v52  ;;  %v2378_v2 = vcombine.low %v223_v53, %v231_v54  ;;  %v2237_v51 = vcombine.high %v80_v45, %v88_v46  ;;  %v96_v53 = vld [vmem:[%s3445_s1 + $0x2a0] sm:$0xff] }
  0x5c   :  { %v2395_v5 = vcombine.high %v239_v63, %v247_v0  ;;  %v104_v54 = vld [vmem:[%s3445_s1 + $0x2e0] sm:$0xff] }
  0x5e   :  { %1668 = vmatpush1.bf16.msra.mxu0 %v2264_v8  ;;  %1709 = vmatpush1.bf16.msra.mxu1 %v2266_v9  ;;  %v255_v8 = vld [vmem:[%s3445_s1 + $0x798] sm:$0xff] }
  0x5f   :  { %1669 = vmatprep.subr.bf16.mxu0 %v2281_v10  ;;  %1710 = vmatprep.subr.bf16.mxu1 %v2283_v11  ;;  %v263_v9 = vld [vmem:[%s3445_s1 + $0x7d8] sm:$0xff]  ;;  %v2392_v10 = vcombine.low %v238_v61, %v246_v62  ;;  %v2394_v11 = vcombine.low %v239_v63, %v247_v0  ;;  %v2253_v61 = vcombine.high %v96_v53, %v104_v54  ;;  %v112_v63 = vld [vmem:[%s3445_s1 + $0x320] sm:$0xff] }
  0x60   :  { %v2411_v13 = vcombine.high %v255_v8, %v263_v9  ;;  %v120_v0 = vld [vmem:[%s3445_s1 + $0x360] sm:$0xff] }
  0x62   :  { %1670 = vmatpush1.bf16.msra.mxu0 %v2280_v16  ;;  %1711 = vmatpush1.bf16.msra.mxu1 %v2282_v17  ;;  %v17_v16 = vld [vmem:[%s3445_s1 + $0x28] sm:$0xff] }
  0x63   :  { %1671 = vmatprep.subr.bf16.mxu0 %v2297_v18  ;;  %1712 = vmatprep.subr.bf16.mxu1 %v2299_v19  ;;  %v25_v17 = vld [vmem:[%s3445_s1 + $0x68] sm:$0xff]  ;;  %v2408_v18 = vcombine.low %v254_v6, %v262_v7  ;;  %v2410_v19 = vcombine.low %v255_v8, %v263_v9  ;;  %v2269_v6 = vcombine.high %v112_v63, %v120_v0  ;;  %v128_v8 = vld [vmem:[%s3445_s1 + $0x3a0] sm:$0xff] }
  0x64   :  { %v2175_v22 = vcombine.high %v17_v16, %v25_v17  ;;  %v136_v9 = vld [vmem:[%s3445_s1 + $0x3e0] sm:$0xff] }
  0x66   :  { %1672 = vmatpush1.bf16.msra.mxu0 %v2296_v25  ;;  %1713 = vmatpush1.bf16.msra.mxu1 %v2298_v26  ;;  %v33_v25 = vld [vmem:[%s3445_s1 + $0xa8] sm:$0xff] }
  0x67   :  { %1673 = vmatprep.subr.bf16.mxu0 %v2313_v56  ;;  %1714 = vmatprep.subr.bf16.mxu1 %v2315_v59  ;;  %v41_v26 = vld [vmem:[%s3445_s1 + $0xe8] sm:$0xff]  ;;  %v2172_v56 = vcombine.low %v16_v14, %v24_v15  ;;  %v2174_v59 = vcombine.low %v17_v16, %v25_v17  ;;  %v2285_v14 = vcombine.high %v128_v8, %v136_v9  ;;  %v144_v16 = vld [vmem:[%s3445_s1 + $0x420] sm:$0xff] }
  0x68   :  { %v2191_v28 = vcombine.high %v33_v25, %v41_v26  ;;  %v152_v17 = vld [vmem:[%s3445_s1 + $0x460] sm:$0xff] }
  0x6a   :  { %1674 = vmatpush1.bf16.msra.mxu0 %v2312_v31  ;;  %1715 = vmatpush1.bf16.msra.mxu1 %v2314_v32  ;;  %v49_v31 = vld [vmem:[%s3445_s1 + $0x128] sm:$0xff] }
  0x6b   :  { %1675 = vmatprep.subr.bf16.mxu0 %v2329_v33  ;;  %1716 = vmatprep.subr.bf16.mxu1 %v2331_v34  ;;  %v57_v32 = vld [vmem:[%s3445_s1 + $0x168] sm:$0xff]  ;;  %v2188_v33 = vcombine.low %v32_v23, %v40_v24  ;;  %v2190_v34 = vcombine.low %v33_v25, %v41_v26  ;;  %v2301_v23 = vcombine.high %v144_v16, %v152_v17  ;;  %v160_v25 = vld [vmem:[%s3445_s1 + $0x4a0] sm:$0xff] }
  0x6c   :  { %v2207_v36 = vcombine.high %v49_v31, %v57_v32  ;;  %v168_v26 = vld [vmem:[%s3445_s1 + $0x4e0] sm:$0xff] }
  0x6e   :  { %1676 = vmatpush1.bf16.msra.mxu0 %v2328_v39  ;;  %1717 = vmatpush1.bf16.msra.mxu1 %v2330_v40  ;;  %v65_v39 = vld [vmem:[%s3445_s1 + $0x1a8] sm:$0xff] }
  0x6f   :  { %1677 = vmatprep.subr.bf16.mxu0 %v2345_v41  ;;  %1718 = vmatprep.subr.bf16.mxu1 %v2347_v42  ;;  %v73_v40 = vld [vmem:[%s3445_s1 + $0x1e8] sm:$0xff]  ;;  %v2204_v41 = vcombine.low %v48_v29, %v56_v30  ;;  %v2206_v42 = vcombine.low %v49_v31, %v57_v32  ;;  %v2317_v29 = vcombine.high %v160_v25, %v168_v26  ;;  %v176_v31 = vld [vmem:[%s3445_s1 + $0x520] sm:$0xff] }
  0x70   :  { %v2223_v44 = vcombine.high %v65_v39, %v73_v40  ;;  %v184_v32 = vld [vmem:[%s3445_s1 + $0x560] sm:$0xff] }
  0x72   :  { %1678 = vmatpush1.bf16.msra.mxu0 %v2344_v47  ;;  %1719 = vmatpush1.bf16.msra.mxu1 %v2346_v48  ;;  %v81_v47 = vld [vmem:[%s3445_s1 + $0x228] sm:$0xff] }
  0x73   :  { %1679 = vmatprep.subr.bf16.mxu0 %v2361_v49  ;;  %1720 = vmatprep.subr.bf16.mxu1 %v2363_v50  ;;  %v89_v48 = vld [vmem:[%s3445_s1 + $0x268] sm:$0xff]  ;;  %v2220_v49 = vcombine.low %v64_v37, %v72_v38  ;;  %v2222_v50 = vcombine.low %v65_v39, %v73_v40  ;;  %v2333_v37 = vcombine.high %v176_v31, %v184_v32  ;;  %v192_v39 = vld [vmem:[%s3445_s1 + $0x5a0] sm:$0xff] }
  0x74   :  { %v2239_v52 = vcombine.high %v81_v47, %v89_v48  ;;  %v200_v40 = vld [vmem:[%s3445_s1 + $0x5e0] sm:$0xff] }
  0x76   :  { %1680 = vmatpush1.bf16.msra.mxu0 %v2360_v55  ;;  %1721 = vmatpush1.bf16.msra.mxu1 %v2362_v57  ;;  %v97_v55 = vld [vmem:[%s3445_s1 + $0x2a8] sm:$0xff] }
  0x77   :  { %1681 = vmatprep.subr.bf16.mxu0 %v2377_v58  ;;  %1722 = vmatprep.subr.bf16.mxu1 %v2379_v60  ;;  %v105_v57 = vld [vmem:[%s3445_s1 + $0x2e8] sm:$0xff]  ;;  %v2236_v58 = vcombine.low %v80_v45, %v88_v46  ;;  %v2238_v60 = vcombine.low %v81_v47, %v89_v48  ;;  %v2349_v45 = vcombine.high %v192_v39, %v200_v40  ;;  %v208_v47 = vld [vmem:[%s3445_s1 + $0x620] sm:$0xff] }
  0x78   :  { %v2255_v62 = vcombine.high %v97_v55, %v105_v57  ;;  %v216_v48 = vld [vmem:[%s3445_s1 + $0x660] sm:$0xff] }
  0x7a   :  { %1682 = vmatpush1.bf16.msra.mxu0 %v2376_v1  ;;  %1723 = vmatpush1.bf16.msra.mxu1 %v2378_v2  ;;  %v113_v1 = vld [vmem:[%s3445_s1 + $0x328] sm:$0xff] }
  0x7b   :  { %1683 = vmatprep.subr.bf16.mxu0 %v2393_v4  ;;  %1724 = vmatprep.subr.bf16.mxu1 %v2395_v5  ;;  %v121_v2 = vld [vmem:[%s3445_s1 + $0x368] sm:$0xff]  ;;  %v2252_v4 = vcombine.low %v96_v53, %v104_v54  ;;  %v2254_v5 = vcombine.low %v97_v55, %v105_v57  ;;  %v2365_v53 = vcombine.high %v208_v47, %v216_v48  ;;  %v224_v55 = vld [vmem:[%s3445_s1 + $0x6a0] sm:$0xff] }
  0x7c   :  { %v2271_v7 = vcombine.high %v113_v1, %v121_v2  ;;  %v232_v57 = vld [vmem:[%s3445_s1 + $0x6e0] sm:$0xff] }
  0x7e   :  { %1684 = vmatpush1.bf16.msra.mxu0 %v2392_v10  ;;  %1725 = vmatpush1.bf16.msra.mxu1 %v2394_v11  ;;  %v129_v10 = vld [vmem:[%s3445_s1 + $0x3a8] sm:$0xff] }
  0x7f   :  { %1685 = vmatprep.subr.bf16.mxu0 %v2409_v12  ;;  %1726 = vmatprep.subr.bf16.mxu1 %v2411_v13  ;;  %v137_v11 = vld [vmem:[%s3445_s1 + $0x3e8] sm:$0xff]  ;;  %v2268_v12 = vcombine.low %v112_v63, %v120_v0  ;;  %v2270_v13 = vcombine.low %v113_v1, %v121_v2  ;;  %v2381_v63 = vcombine.high %v224_v55, %v232_v57  ;;  %v240_v1 = vld [vmem:[%s3445_s1 + $0x720] sm:$0xff] }
  0x80   :  { %v2287_v15 = vcombine.high %v129_v10, %v137_v11  ;;  %v248_v2 = vld [vmem:[%s3445_s1 + $0x760] sm:$0xff] }
  0x82   :  { %1686 = vmatpush1.bf16.msra.mxu0 %v2408_v18  ;;  %1727 = vmatpush1.bf16.msra.mxu1 %v2410_v19  ;;  %v145_v18 = vld [vmem:[%s3445_s1 + $0x428] sm:$0xff] }
  0x83   :  { %1737 = vmatprep.subr.bf16.mxu0 %v2173_v21  ;;  %1778 = vmatprep.subr.bf16.mxu1 %v2175_v22  ;;  %v153_v19 = vld [vmem:[%s3445_s1 + $0x468] sm:$0xff]  ;;  %v2284_v21 = vcombine.low %v128_v8, %v136_v9  ;;  %v2286_v22 = vcombine.low %v129_v10, %v137_v11  ;;  %v2397_v8 = vcombine.high %v240_v1, %v248_v2  ;;  %v256_v10 = vld [vmem:[%s3445_s1 + $0x7a0] sm:$0xff] }
  0x84   :  { %v2303_v24 = vcombine.high %v145_v18, %v153_v19  ;;  %v264_v11 = vld [vmem:[%s3445_s1 + $0x7e0] sm:$0xff] }
  0x85   :  { %1688 = vmatmul.mubr.bf16.vlgmr.msra.gmra.mrb[4].mxu0 %v2687_v20  ;;  %1729 = vmatmul.mubr.bf16.vlgmr.msra.gmra.mrb[4].mxu1 %v2687_v20 }
  0x86   :  { %1738 = vmatpush1.bf16.msra.mxu0 %v2172_v56  ;;  %1779 = vmatpush1.bf16.msra.mxu1 %v2174_v59  ;;  %v161_v56 = vld [vmem:[%s3445_s1 + $0x4a8] sm:$0xff] }
  0x87   :  { %1739 = vmatprep.subr.bf16.mxu0 %v2189_v27  ;;  %1780 = vmatprep.subr.bf16.mxu1 %v2191_v28  ;;  %v169_v59 = vld [vmem:[%s3445_s1 + $0x4e8] sm:$0xff]  ;;  %v2300_v27 = vcombine.low %v144_v16, %v152_v17  ;;  %v2302_v28 = vcombine.low %v145_v18, %v153_v19  ;;  %v2413_v16 = vcombine.high %v256_v10, %v264_v11  ;;  %v18_v18 = vld [vmem:[%s3445_s1 + $0x30] sm:$0xff] }
  0x88   :  { %1769 = vmatprep.mubr.bf16.mxu0 %v2567_v3  ;;  %1810 = vmatprep.mubr.bf16.mxu1 %v2567_v3  ;;  %v2319_v30 = vcombine.high %v161_v56, %v169_v59  ;;  %v26_v19 = vld [vmem:[%s3445_s1 + $0x70] sm:$0xff] }
  0x8a   :  { %1740 = vmatpush1.bf16.msra.mxu0 %v2188_v33  ;;  %1781 = vmatpush1.bf16.msra.mxu1 %v2190_v34  ;;  %v177_v33 = vld [vmem:[%s3445_s1 + $0x528] sm:$0xff] }
  0x8b   :  { %1741 = vmatprep.subr.bf16.mxu0 %v2205_v35  ;;  %1782 = vmatprep.subr.bf16.mxu1 %v2207_v36  ;;  %v185_v34 = vld [vmem:[%s3445_s1 + $0x568] sm:$0xff]  ;;  %v2316_v35 = vcombine.low %v160_v25, %v168_v26  ;;  %v2318_v36 = vcombine.low %v161_v56, %v169_v59  ;;  %v2177_v25 = vcombine.high %v18_v18, %v26_v19  ;;  %v34_v56 = vld [vmem:[%s3445_s1 + $0xb0] sm:$0xff] }
  0x8c   :  { %v2335_v38 = vcombine.high %v177_v33, %v185_v34  ;;  %v42_v59 = vld [vmem:[%s3445_s1 + $0xf0] sm:$0xff] }
  0x8e   :  { %1742 = vmatpush1.bf16.msra.mxu0 %v2204_v41  ;;  %1783 = vmatpush1.bf16.msra.mxu1 %v2206_v42  ;;  %v193_v41 = vld [vmem:[%s3445_s1 + $0x5a8] sm:$0xff] }
  0x8f   :  { %1743 = vmatprep.subr.bf16.mxu0 %v2221_v43  ;;  %1784 = vmatprep.subr.bf16.mxu1 %v2223_v44  ;;  %v201_v42 = vld [vmem:[%s3445_s1 + $0x5e8] sm:$0xff]  ;;  %v2332_v43 = vcombine.low %v176_v31, %v184_v32  ;;  %v2334_v44 = vcombine.low %v177_v33, %v185_v34  ;;  %v2193_v31 = vcombine.high %v34_v56, %v42_v59  ;;  %v50_v33 = vld [vmem:[%s3445_s1 + $0x130] sm:$0xff] }
  0x90   :  { %v2351_v46 = vcombine.high %v193_v41, %v201_v42  ;;  %v58_v34 = vld [vmem:[%s3445_s1 + $0x170] sm:$0xff] }
  0x92   :  { %1744 = vmatpush1.bf16.msra.mxu0 %v2220_v49  ;;  %1785 = vmatpush1.bf16.msra.mxu1 %v2222_v50  ;;  %v209_v49 = vld [vmem:[%s3445_s1 + $0x628] sm:$0xff] }
  0x93   :  { %1745 = vmatprep.subr.bf16.mxu0 %v2237_v51  ;;  %1786 = vmatprep.subr.bf16.mxu1 %v2239_v52  ;;  %v217_v50 = vld [vmem:[%s3445_s1 + $0x668] sm:$0xff]  ;;  %v2348_v51 = vcombine.low %v192_v39, %v200_v40  ;;  %v2350_v52 = vcombine.low %v193_v41, %v201_v42  ;;  %v2209_v39 = vcombine.high %v50_v33, %v58_v34  ;;  %v66_v41 = vld [vmem:[%s3445_s1 + $0x1b0] sm:$0xff] }
  0x94   :  { %v2367_v54 = vcombine.high %v209_v49, %v217_v50  ;;  %v74_v42 = vld [vmem:[%s3445_s1 + $0x1f0] sm:$0xff] }
  0x96   :  { %1746 = vmatpush1.bf16.msra.mxu0 %v2236_v58  ;;  %1787 = vmatpush1.bf16.msra.mxu1 %v2238_v60  ;;  %v225_v58 = vld [vmem:[%s3445_s1 + $0x6a8] sm:$0xff] }
  0x97   :  { %1747 = vmatprep.subr.bf16.mxu0 %v2253_v61  ;;  %1788 = vmatprep.subr.bf16.mxu1 %v2255_v62  ;;  %v233_v60 = vld [vmem:[%s3445_s1 + $0x6e8] sm:$0xff]  ;;  %v2364_v61 = vcombine.low %v208_v47, %v216_v48  ;;  %v2366_v62 = vcombine.low %v209_v49, %v217_v50  ;;  %v2225_v47 = vcombine.high %v66_v41, %v74_v42  ;;  %v82_v49 = vld [vmem:[%s3445_s1 + $0x230] sm:$0xff] }
  0x98   :  { %v2383_v0 = vcombine.high %v225_v58, %v233_v60  ;;  %v90_v50 = vld [vmem:[%s3445_s1 + $0x270] sm:$0xff] }
  0x9a   :  { %1748 = vmatpush1.bf16.msra.mxu0 %v2252_v4  ;;  %1789 = vmatpush1.bf16.msra.mxu1 %v2254_v5  ;;  %v241_v4 = vld [vmem:[%s3445_s1 + $0x728] sm:$0xff] }
  0x9b   :  { %1749 = vmatprep.subr.bf16.mxu0 %v2269_v6  ;;  %1790 = vmatprep.subr.bf16.mxu1 %v2271_v7  ;;  %v249_v5 = vld [vmem:[%s3445_s1 + $0x768] sm:$0xff]  ;;  %v2380_v6 = vcombine.low %v224_v55, %v232_v57  ;;  %v2382_v7 = vcombine.low %v225_v58, %v233_v60  ;;  %v98_v57 = vld [vmem:[%s3445_s1 + $0x2b0] sm:$0xff]  ;;  %v99_v60 = vld [vmem:[%s3445_s1 + $0x2b8] sm:$0xff] }
  0x9c   :  { %v2399_v9 = vcombine.high %v241_v4, %v249_v5  ;;  %v106_v58 = vld [vmem:[%s3445_s1 + $0x2f0] sm:$0xff] }
  0x9e   :  { %1750 = vmatpush1.bf16.msra.mxu0 %v2268_v12  ;;  %1791 = vmatpush1.bf16.msra.mxu1 %v2270_v13  ;;  %v257_v12 = vld [vmem:[%s3445_s1 + $0x7a8] sm:$0xff] }
  0x9f   :  { %1751 = vmatprep.subr.bf16.mxu0 %v2285_v14  ;;  %1792 = vmatprep.subr.bf16.mxu1 %v2287_v15  ;;  %v265_v13 = vld [vmem:[%s3445_s1 + $0x7e8] sm:$0xff]  ;;  %v2396_v14 = vcombine.low %v240_v1, %v248_v2  ;;  %v2398_v15 = vcombine.low %v241_v4, %v249_v5  ;;  %v114_v2 = vld [vmem:[%s3445_s1 + $0x330] sm:$0xff]  ;;  %v115_v5 = vld [vmem:[%s3445_s1 + $0x338] sm:$0xff] }
  0xa0   :  { %v2415_v17 = vcombine.high %v257_v12, %v265_v13  ;;  %v122_v4 = vld [vmem:[%s3445_s1 + $0x370] sm:$0xff] }
  0xa2   :  { %1752 = vmatpush1.bf16.msra.mxu0 %v2284_v21  ;;  %1793 = vmatpush1.bf16.msra.mxu1 %v2286_v22  ;;  %v19_v21 = vld [vmem:[%s3445_s1 + $0x38] sm:$0xff] }
  0xa3   :  { %1753 = vmatprep.subr.bf16.mxu0 %v2301_v23  ;;  %1794 = vmatprep.subr.bf16.mxu1 %v2303_v24  ;;  %v27_v22 = vld [vmem:[%s3445_s1 + $0x78] sm:$0xff]  ;;  %v2412_v23 = vcombine.low %v256_v10, %v264_v11  ;;  %v2414_v24 = vcombine.low %v257_v12, %v265_v13  ;;  %v130_v11 = vld [vmem:[%s3445_s1 + $0x3b0] sm:$0xff] }
  0xa4   :  { %v2179_v26 = vcombine.high %v19_v21, %v27_v22  ;;  %v138_v12 = vld [vmem:[%s3445_s1 + $0x3f0] sm:$0xff]  ;;  %v131_v13 = vld [vmem:[%s3445_s1 + $0x3b8] sm:$0xff] }
  0xa6   :  { %1754 = vmatpush1.bf16.msra.mxu0 %v2300_v27  ;;  %1795 = vmatpush1.bf16.msra.mxu1 %v2302_v28  ;;  %v35_v27 = vld [vmem:[%s3445_s1 + $0xb8] sm:$0xff] }
  0xa7   :  { %1755 = vmatprep.subr.bf16.mxu0 %v2317_v29  ;;  %1796 = vmatprep.subr.bf16.mxu1 %v2319_v30  ;;  %v43_v28 = vld [vmem:[%s3445_s1 + $0xf8] sm:$0xff]  ;;  %v2176_v29 = vcombine.low %v18_v18, %v26_v19  ;;  %v2178_v30 = vcombine.low %v19_v21, %v27_v22  ;;  %v146_v19 = vld [vmem:[%s3445_s1 + $0x430] sm:$0xff] }
  0xa8   :  { %v2195_v32 = vcombine.high %v35_v27, %v43_v28  ;;  %v154_v21 = vld [vmem:[%s3445_s1 + $0x470] sm:$0xff]  ;;  %v147_v22 = vld [vmem:[%s3445_s1 + $0x438] sm:$0xff] }
  0xaa   :  { %1756 = vmatpush1.bf16.msra.mxu0 %v2316_v35  ;;  %1797 = vmatpush1.bf16.msra.mxu1 %v2318_v36  ;;  %v51_v35 = vld [vmem:[%s3445_s1 + $0x138] sm:$0xff] }
  0xab   :  { %1757 = vmatprep.subr.bf16.mxu0 %v2333_v37  ;;  %1798 = vmatprep.subr.bf16.mxu1 %v2335_v38  ;;  %v59_v36 = vld [vmem:[%s3445_s1 + $0x178] sm:$0xff]  ;;  %v2192_v37 = vcombine.low %v34_v56, %v42_v59  ;;  %v2194_v38 = vcombine.low %v35_v27, %v43_v28  ;;  %v162_v59 = vld [vmem:[%s3445_s1 + $0x4b0] sm:$0xff] }
  0xac   :  { %v2211_v40 = vcombine.high %v51_v35, %v59_v36  ;;  %v170_v27 = vld [vmem:[%s3445_s1 + $0x4f0] sm:$0xff]  ;;  %v163_v28 = vld [vmem:[%s3445_s1 + $0x4b8] sm:$0xff] }
  0xae   :  { %1758 = vmatpush1.bf16.msra.mxu0 %v2332_v43  ;;  %1799 = vmatpush1.bf16.msra.mxu1 %v2334_v44  ;;  %v67_v43 = vld [vmem:[%s3445_s1 + $0x1b8] sm:$0xff] }
  0xaf   :  { %1759 = vmatprep.subr.bf16.mxu0 %v2349_v45  ;;  %1800 = vmatprep.subr.bf16.mxu1 %v2351_v46  ;;  %v75_v44 = vld [vmem:[%s3445_s1 + $0x1f8] sm:$0xff]  ;;  %v2208_v45 = vcombine.low %v50_v33, %v58_v34  ;;  %v2210_v46 = vcombine.low %v51_v35, %v59_v36  ;;  %v178_v34 = vld [vmem:[%s3445_s1 + $0x530] sm:$0xff] }
  0xb0   :  { %v2227_v48 = vcombine.high %v67_v43, %v75_v44  ;;  %v186_v35 = vld [vmem:[%s3445_s1 + $0x570] sm:$0xff]  ;;  %v179_v36 = vld [vmem:[%s3445_s1 + $0x538] sm:$0xff] }
  0xb2   :  { %1760 = vmatpush1.bf16.msra.mxu0 %v2348_v51  ;;  %1801 = vmatpush1.bf16.msra.mxu1 %v2350_v52  ;;  %v91_v51 = vld [vmem:[%s3445_s1 + $0x278] sm:$0xff]  ;;  %v2224_v52 = vcombine.low %v66_v41, %v74_v42  ;;  %v194_v42 = vld [vmem:[%s3445_s1 + $0x5b0] sm:$0xff] }
  0xb3   :  { %1761 = vmatprep.subr.bf16.mxu0 %v2365_v53  ;;  %1802 = vmatprep.subr.bf16.mxu1 %v2367_v54  ;;  %v2226_v53 = vcombine.low %v67_v43, %v75_v44  ;;  %v2241_v54 = vcombine.high %v82_v49, %v90_v50  ;;  %v202_v43 = vld [vmem:[%s3445_s1 + $0x5f0] sm:$0xff]  ;;  %v195_v44 = vld [vmem:[%s3445_s1 + $0x5b8] sm:$0xff] }
  0xb6   :  { %1762 = vmatpush1.bf16.msra.mxu0 %v2364_v61  ;;  %1803 = vmatpush1.bf16.msra.mxu1 %v2366_v62  ;;  %v107_v61 = vld [vmem:[%s3445_s1 + $0x2f8] sm:$0xff]  ;;  %v2240_v62 = vcombine.low %v82_v49, %v90_v50  ;;  %v210_v50 = vld [vmem:[%s3445_s1 + $0x630] sm:$0xff] }
  0xb7   :  { %1763 = vmatprep.subr.bf16.mxu0 %v2381_v63  ;;  %1804 = vmatprep.subr.bf16.mxu1 %v2383_v0  ;;  %v2257_v0 = vcombine.high %v98_v57, %v106_v58  ;;  %v2259_v1 = vcombine.high %v99_v60, %v107_v61 }
  0xba   :  { %1764 = vmatpush1.bf16.msra.mxu0 %v2380_v6  ;;  %1805 = vmatpush1.bf16.msra.mxu1 %v2382_v7  ;;  %v123_v6 = vld [vmem:[%s3445_s1 + $0x378] sm:$0xff]  ;;  %v2256_v7 = vcombine.low %v98_v57, %v106_v58  ;;  %v226_v58 = vld [vmem:[%s3445_s1 + $0x6b0] sm:$0xff] }
  0xbb   :  { %1765 = vmatprep.subr.bf16.mxu0 %v2397_v8  ;;  %1806 = vmatprep.subr.bf16.mxu1 %v2399_v9  ;;  %v2258_v8 = vcombine.low %v99_v60, %v107_v61  ;;  %v2273_v9 = vcombine.high %v114_v2, %v122_v4  ;;  %v2275_v10 = vcombine.high %v115_v5, %v123_v6  ;;  %v234_v60 = vld [vmem:[%s3445_s1 + $0x6f0] sm:$0xff]  ;;  %v227_v61 = vld [vmem:[%s3445_s1 + $0x6b8] sm:$0xff] }
  0xbe   :  { %1766 = vmatpush1.bf16.msra.mxu0 %v2396_v14  ;;  %1807 = vmatpush1.bf16.msra.mxu1 %v2398_v15  ;;  %v139_v14 = vld [vmem:[%s3445_s1 + $0x3f8] sm:$0xff]  ;;  %v2272_v15 = vcombine.low %v114_v2, %v122_v4  ;;  %v242_v4 = vld [vmem:[%s3445_s1 + $0x730] sm:$0xff] }
  0xbf   :  { %1767 = vmatprep.subr.bf16.mxu0 %v2413_v16  ;;  %1808 = vmatprep.subr.bf16.mxu1 %v2415_v17  ;;  %v2274_v16 = vcombine.low %v115_v5, %v123_v6  ;;  %v2289_v17 = vcombine.high %v130_v11, %v138_v12  ;;  %v2291_v18 = vcombine.high %v131_v13, %v139_v14  ;;  %v250_v5 = vld [vmem:[%s3445_s1 + $0x770] sm:$0xff]  ;;  %v243_v6 = vld [vmem:[%s3445_s1 + $0x738] sm:$0xff] }
  0xc2   :  { %1768 = vmatpush1.bf16.msra.mxu0 %v2412_v23  ;;  %1809 = vmatpush1.bf16.msra.mxu1 %v2414_v24  ;;  %v155_v23 = vld [vmem:[%s3445_s1 + $0x478] sm:$0xff]  ;;  %v2288_v24 = vcombine.low %v130_v11, %v138_v12  ;;  %v258_v12 = vld [vmem:[%s3445_s1 + $0x7b0] sm:$0xff] }
  0xc3   :  { %1819 = vmatprep.subr.bf16.mxu0 %v2177_v25  ;;  %1860 = vmatprep.subr.bf16.mxu1 %v2179_v26  ;;  %v2290_v25 = vcombine.low %v131_v13, %v139_v14  ;;  %v2305_v26 = vcombine.high %v146_v19, %v154_v21  ;;  %v2307_v56 = vcombine.high %v147_v22, %v155_v23  ;;  %v266_v13 = vld [vmem:[%s3445_s1 + $0x7f0] sm:$0xff]  ;;  %v259_v14 = vld [vmem:[%s3445_s1 + $0x7b8] sm:$0xff] }
  0xc5   :  { %1770 = vmatmul.mubr.bf16.vlgmr.msra.gmra.mrb[8].mxu0 %v2687_v20  ;;  %1811 = vmatmul.mubr.bf16.vlgmr.msra.gmra.mrb[8].mxu1 %v2687_v20 }
  0xc6   :  { %1820 = vmatpush1.bf16.msra.mxu0 %v2176_v29  ;;  %1861 = vmatpush1.bf16.msra.mxu1 %v2178_v30  ;;  %v171_v29 = vld [vmem:[%s3445_s1 + $0x4f8] sm:$0xff]  ;;  %v2304_v30 = vcombine.low %v146_v19, %v154_v21  ;;  %v2416_v21 = vcombine.low %v258_v12, %v266_v13 }
  0xc7   :  { %1821 = vmatprep.subr.bf16.mxu0 %v2193_v31  ;;  %1862 = vmatprep.subr.bf16.mxu1 %v2195_v32  ;;  %v2306_v31 = vcombine.low %v147_v22, %v155_v23  ;;  %v2321_v32 = vcombine.high %v162_v59, %v170_v27  ;;  %v2323_v33 = vcombine.high %v163_v28, %v171_v29 }
  0xc8   :  { %1851 = vmatprep.mubr.bf16.mxu0 %v2567_v3  ;;  %1892 = vmatprep.mubr.bf16.mxu1 %v2567_v3  ;;  %v83_v3 = vld [vmem:[%s3445_s1 + $0x238] sm:$0xff] }
  0xc9   :  { %v2243_v55 = vcombine.high %v83_v3, %v91_v51  ;;  %v2242_v63 = vcombine.low %v83_v3, %v91_v51  ;;  %v218_v3 = vld [vmem:[%s3445_s1 + $0x670] sm:$0xff]  ;;  %v211_v51 = vld [vmem:[%s3445_s1 + $0x638] sm:$0xff] }
  0xca   :  { %1822 = vmatpush1.bf16.msra.mxu0 %v2192_v37  ;;  %1863 = vmatpush1.bf16.msra.mxu1 %v2194_v38  ;;  %v187_v37 = vld [vmem:[%s3445_s1 + $0x578] sm:$0xff]  ;;  %v2320_v38 = vcombine.low %v162_v59, %v170_v27 }
  0xcb   :  { %1823 = vmatprep.subr.bf16.mxu0 %v2209_v39  ;;  %1864 = vmatprep.subr.bf16.mxu1 %v2211_v40  ;;  %v2322_v39 = vcombine.low %v163_v28, %v171_v29  ;;  %v2337_v40 = vcombine.high %v178_v34, %v186_v35  ;;  %v2339_v41 = vcombine.high %v179_v36, %v187_v37 }
  0xce   :  { %1824 = vmatpush1.bf16.msra.mxu0 %v2208_v45  ;;  %1865 = vmatpush1.bf16.msra.mxu1 %v2210_v46  ;;  %v203_v45 = vld [vmem:[%s3445_s1 + $0x5f8] sm:$0xff]  ;;  %v2336_v46 = vcombine.low %v178_v34, %v186_v35 }
  0xcf   :  { %1825 = vmatprep.subr.bf16.mxu0 %v2225_v47  ;;  %1866 = vmatprep.subr.bf16.mxu1 %v2227_v48  ;;  %v2338_v47 = vcombine.low %v179_v36, %v187_v37  ;;  %v2353_v48 = vcombine.high %v194_v42, %v202_v43  ;;  %v2355_v49 = vcombine.high %v195_v44, %v203_v45 }
  0xd2   :  { %1826 = vmatpush1.bf16.msra.mxu0 %v2224_v52  ;;  %1867 = vmatpush1.bf16.msra.mxu1 %v2226_v53  ;;  %v219_v52 = vld [vmem:[%s3445_s1 + $0x678] sm:$0xff]  ;;  %v2352_v53 = vcombine.low %v194_v42, %v202_v43 }
  0xd3   :  { %1827 = vmatprep.subr.bf16.mxu0 %v2241_v54  ;;  %1868 = vmatprep.subr.bf16.mxu1 %v2243_v55  ;;  %v2354_v54 = vcombine.low %v195_v44, %v203_v45  ;;  %v2369_v55 = vcombine.high %v210_v50, %v218_v3  ;;  %v2371_v57 = vcombine.high %v211_v51, %v219_v52 }
  0xd6   :  { %1828 = vmatpush1.bf16.msra.mxu0 %v2240_v62  ;;  %1869 = vmatpush1.bf16.msra.mxu1 %v2242_v63  ;;  %v235_v62 = vld [vmem:[%s3445_s1 + $0x6f8] sm:$0xff]  ;;  %v2368_v63 = vcombine.low %v210_v50, %v218_v3 }
  0xd7   :  { %1829 = vmatprep.subr.bf16.mxu0 %v2257_v0  ;;  %1870 = vmatprep.subr.bf16.mxu1 %v2259_v1  ;;  %v2370_v0 = vcombine.low %v211_v51, %v219_v52  ;;  %v2385_v1 = vcombine.high %v226_v58, %v234_v60  ;;  %v2387_v2 = vcombine.high %v227_v61, %v235_v62 }
  0xda   :  { %1830 = vmatpush1.bf16.msra.mxu0 %v2256_v7  ;;  %1871 = vmatpush1.bf16.msra.mxu1 %v2258_v8  ;;  %v251_v7 = vld [vmem:[%s3445_s1 + $0x778] sm:$0xff]  ;;  %v2384_v8 = vcombine.low %v226_v58, %v234_v60 }
  0xdb   :  { %1831 = vmatprep.subr.bf16.mxu0 %v2273_v9  ;;  %1872 = vmatprep.subr.bf16.mxu1 %v2275_v10  ;;  %v2386_v9 = vcombine.low %v227_v61, %v235_v62  ;;  %v2401_v10 = vcombine.high %v242_v4, %v250_v5  ;;  %v2403_v11 = vcombine.high %v243_v6, %v251_v7 }
  0xde   :  { %1832 = vmatpush1.bf16.msra.mxu0 %v2272_v15  ;;  %1873 = vmatpush1.bf16.msra.mxu1 %v2274_v16  ;;  %v267_v15 = vld [vmem:[%s3445_s1 + $0x7f8] sm:$0xff]  ;;  %v2400_v16 = vcombine.low %v242_v4, %v250_v5 }
  0xdf   :  { %1833 = vmatprep.subr.bf16.mxu0 %v2289_v17  ;;  %1874 = vmatprep.subr.bf16.mxu1 %v2291_v18  ;;  %v2402_v17 = vcombine.low %v243_v6, %v251_v7  ;;  %v2417_v18 = vcombine.high %v258_v12, %v266_v13  ;;  %v2419_v19 = vcombine.high %v259_v14, %v267_v15 }
  0xe0   :  { %v2418_v22 = vcombine.low %v259_v14, %v267_v15 }
  0xe2   :  { %1834 = vmatpush1.bf16.msra.mxu0 %v2288_v24  ;;  %1875 = vmatpush1.bf16.msra.mxu1 %v2290_v25 }
  0xe3   :  { %1835 = vmatprep.subr.bf16.mxu0 %v2305_v26  ;;  %1876 = vmatprep.subr.bf16.mxu1 %v2307_v56 }
  0xe6   :  { %1836 = vmatpush1.bf16.msra.mxu0 %v2304_v30  ;;  %1877 = vmatpush1.bf16.msra.mxu1 %v2306_v31 }
  0xe7   :  { %1837 = vmatprep.subr.bf16.mxu0 %v2321_v32  ;;  %1878 = vmatprep.subr.bf16.mxu1 %v2323_v33 }
  0xea   :  { %1838 = vmatpush1.bf16.msra.mxu0 %v2320_v38  ;;  %1879 = vmatpush1.bf16.msra.mxu1 %v2322_v39 }
  0xeb   :  { %1839 = vmatprep.subr.bf16.mxu0 %v2337_v40  ;;  %1880 = vmatprep.subr.bf16.mxu1 %v2339_v41 }
  0xee   :  { %1840 = vmatpush1.bf16.msra.mxu0 %v2336_v46  ;;  %1881 = vmatpush1.bf16.msra.mxu1 %v2338_v47 }
  0xef   :  { %1841 = vmatprep.subr.bf16.mxu0 %v2353_v48  ;;  %1882 = vmatprep.subr.bf16.mxu1 %v2355_v49 }
  0xf2   :  { %1842 = vmatpush1.bf16.msra.mxu0 %v2352_v53  ;;  %1883 = vmatpush1.bf16.msra.mxu1 %v2354_v54 }
  0xf3   :  { %1843 = vmatprep.subr.bf16.mxu0 %v2369_v55  ;;  %1884 = vmatprep.subr.bf16.mxu1 %v2371_v57 }
  0xf6   :  { %1844 = vmatpush1.bf16.msra.mxu0 %v2368_v63  ;;  %1885 = vmatpush1.bf16.msra.mxu1 %v2370_v0 }
  0xf7   :  { %1845 = vmatprep.subr.bf16.mxu0 %v2385_v1  ;;  %1886 = vmatprep.subr.bf16.mxu1 %v2387_v2 }
  0xfa   :  { %1846 = vmatpush1.bf16.msra.mxu0 %v2384_v8  ;;  %1887 = vmatpush1.bf16.msra.mxu1 %v2386_v9 }
  0xfb   :  { %1847 = vmatprep.subr.bf16.mxu0 %v2401_v10  ;;  %1888 = vmatprep.subr.bf16.mxu1 %v2403_v11 }
  0xfe   :  { %1848 = vmatpush1.bf16.msra.mxu0 %v2400_v16  ;;  %1889 = vmatpush1.bf16.msra.mxu1 %v2402_v17 }
  0xff   :  { %1849 = vmatprep.subr.bf16.mxu0 %v2417_v18  ;;  %1890 = vmatprep.subr.bf16.mxu1 %v2419_v19 }
 0x102   :  { %1850 = vmatpush1.bf16.msra.mxu0 %v2416_v21  ;;  %1891 = vmatpush1.bf16.msra.mxu1 %v2418_v22 }
 0x105   :  { %1852 = vmatmul.mubr.bf16.vlgmr.msra.gmra.mrb[12].mxu0 %v2687_v20  ;;  %1893 = vmatmul.mubr.bf16.vlgmr.msra.gmra.mrb[12].mxu1 %v2687_v20 }
 0x118   :  { %v1607_v23 = vpop.f32.mrb[0].mxu0  ;;  %v1648_v24 = vpop.f32.mrb[0].mxu1 }
 0x119   :  { %v1609_v25 = vpop.f32.mrb[1].mxu0  ;;  %v1902_v26 = vsel %vm1901_vm0, %v1607_v23, 0.0  ;;  %v1935_v56 = vsel %vm1901_vm0, %v1648_v24, 0.0  ;;  %v1650_v59 = vpop.f32.mrb[1].mxu1 }
 0x11a   :  { %v1611_v27 = vpop.f32.mrb[2].mxu0  ;;  %v1903_v28 = vsel %vm1901_vm0, %v1609_v25, 0.0  ;;  %v1936_v29 = vsel %vm1901_vm0, %v1650_v59, 0.0  ;;  %v1652_v30 = vpop.f32.mrb[2].mxu1 }
 0x11b   :  { %v1612_v31 = vpop.f32.mrb[3].mxu0  ;;  %v1904_v32 = vadd.f32 %v1903_v28, %v1902_v26  ;;  %v1653_v33 = vpop.f32.mrb[3].mxu1  ;;  %v1937_v34 = vadd.f32 %v1936_v29, %v1935_v56 }
 0x11d   :  { %1905 = vadd.xlane.f32.xlu0 %v1904_v32 }
 0x121   :  { %1938 = vadd.xlane.f32.xlu0 %v1937_v34 }
 0x158   :  { %v3265_v20 = vpop.f32.mrb[4].mxu0  ;;  %v3267_v35 = vpop.f32.mrb[4].mxu1 }
 0x159   :  { %v3269_v36 = vpop.f32.mrb[5].mxu0  ;;  %v1967_v37 = vsel %vm1901_vm0, %v3265_v20, 0.0  ;;  %v1999_v38 = vsel %vm1901_vm0, %v3267_v35, 0.0  ;;  %v3275_v39 = vpop.f32.mrb[5].mxu1 }
 0x15a   :  { %v1693_v40 = vpop.f32.mrb[6].mxu0  ;;  %v1968_v41 = vsel %vm1901_vm0, %v3269_v36, 0.0  ;;  %v2000_v42 = vsel %vm1901_vm0, %v3275_v39, 0.0  ;;  %v1734_v43 = vpop.f32.mrb[6].mxu1 }
 0x15b   :  { %v1694_v44 = vpop.f32.mrb[7].mxu0  ;;  %v1969_v45 = vadd.f32 %v1968_v41, %v1967_v37  ;;  %v1735_v46 = vpop.f32.mrb[7].mxu1  ;;  %v2001_v47 = vadd.f32 %v2000_v42, %v1999_v38 }
 0x15d   :  { %1970 = vadd.xlane.f32.xlu1 %v1969_v45 }
 0x161   :  { %2002 = vadd.xlane.f32.xlu1 %v2001_v47 }
 0x198   :  { %v3281_v48 = vpop.f32.mrb[8].mxu0  ;;  %v3285_v50 = vpop.f32.mrb[8].mxu1 }
 0x199   :  { %v2031_v49 = vsel %vm1901_vm0, %v3281_v48, 0.0  ;;  %v3287_v3 = vpop.f32.mrb[9].mxu0  ;;  %v2063_v51 = vsel %vm1901_vm0, %v3285_v50, 0.0  ;;  %v3293_v53 = vpop.f32.mrb[9].mxu1 }
 0x19a   :  { %v2032_v52 = vsel %vm1901_vm0, %v3287_v3, 0.0  ;;  %v1775_v54 = vpop.f32.mrb[10].mxu0  ;;  %v2064_v55 = vsel %vm1901_vm0, %v3293_v53, 0.0  ;;  %v1816_v57 = vpop.f32.mrb[10].mxu1 }
 0x19b   :  { %v1776_v58 = vpop.f32.mrb[11].mxu0  ;;  %v2033_v60 = vadd.f32 %v2032_v52, %v2031_v49  ;;  %v1817_v61 = vpop.f32.mrb[11].mxu1  ;;  %v2065_v62 = vadd.f32 %v2064_v55, %v2063_v51 }
 0x19d   :  { %2034 = vadd.xlane.f32.xlu0 %v2033_v60  ;;  %2066 = vadd.xlane.f32.xlu1 %v2065_v62 }
 0x1aa   :  { %v1906_v63 = vpop.xlane.xlu0 %1905 }
 0x1ab   :  { %v1908_v1 = vmul.f32 0.00390625, %v1906_v63 }
 0x1ad   :  { %v3297_v4 = vsub.f32 %v1607_v23, %v1908_v1  ;;  %v3299_v5 = vsub.f32 %v1609_v25, %v1908_v1 }
 0x1ae   :  { %v1939_v0 = vpop.xlane.xlu0 %1938 }
 0x1af   :  { %v1940_v2 = vmul.f32 0.00390625, %v1939_v0  ;;  %v1911_v9 = vmul.f32 %v3297_v4, %v3297_v4  ;;  %v1912_v10 = vmul.f32 %v3299_v5, %v3299_v5 }
 0x1b1   :  { %v3301_v6 = vsub.f32 %v1648_v24, %v1940_v2  ;;  %v3303_v7 = vsub.f32 %v1650_v59, %v1940_v2  ;;  %v1913_v56 = vsel %vm1901_vm0, %v1911_v9, 0.0  ;;  %v1914_v59 = vsel %vm1901_vm0, %v1912_v10, 0.0 }
 0x1b2   :  { %v1915_v29 = vadd.f32 %v1914_v59, %v1913_v56 }
 0x1b3   :  { %v1943_v14 = vmul.f32 %v3301_v6, %v3301_v6  ;;  %v1944_v15 = vmul.f32 %v3303_v7, %v3303_v7 }
 0x1b5   :  { %v1945_v27 = vsel %vm1901_vm0, %v1943_v14, 0.0  ;;  %v1946_v28 = vsel %vm1901_vm0, %v1944_v15, 0.0 }
 0x1b6   :  { %v1947_v30 = vadd.f32 %v1946_v28, %v1945_v27 }
 0x1d8   :  { %v3305_v8 = vpop.f32.mrb[12].mxu0  ;;  %v3313_v12 = vpop.f32.mrb[12].mxu1 }
 0x1d9   :  { %v2095_v11 = vsel %vm1901_vm0, %v3305_v8, 0.0  ;;  %v3315_v13 = vpop.f32.mrb[13].mxu0  ;;  %v2127_v16 = vsel %vm1901_vm0, %v3313_v12, 0.0  ;;  %v3325_v18 = vpop.f32.mrb[13].mxu1 }
 0x1da   :  { %v2096_v17 = vsel %vm1901_vm0, %v3315_v13, 0.0  ;;  %v1857_v19 = vpop.f32.mrb[14].mxu0  ;;  %v2128_v21 = vsel %vm1901_vm0, %v3325_v18, 0.0  ;;  %v1898_v22 = vpop.f32.mrb[14].mxu1 }
 0x1db   :  { %v1858_v23 = vpop.f32.mrb[15].mxu0  ;;  %v2097_v24 = vadd.f32 %v2096_v17, %v2095_v11  ;;  %v1899_v25 = vpop.f32.mrb[15].mxu1  ;;  %v2129_v26 = vadd.f32 %v2128_v21, %v2127_v16 }
 0x1dd   :  { %2098 = vadd.xlane.f32.xlu0 %v2097_v24  ;;  %2130 = vadd.xlane.f32.xlu1 %v2129_v26 }
 0x1e1   :  { %1916 = vadd.xlane.f32.xlu0 %v1915_v29  ;;  %1948 = vadd.xlane.f32.xlu1 %v1947_v30 }
 0x1ea   :  { %v1971_v31 = vpop.xlane.xlu1 %1970 }
 0x1eb   :  { %v1972_v32 = vmul.f32 0.00390625, %v1971_v31 }
 0x1ed   :  { %v3334_v33 = vsub.f32 %v3265_v20, %v1972_v32  ;;  %v3337_v34 = vsub.f32 %v3269_v36, %v1972_v32 }
 0x1ee   :  { %v2003_v37 = vpop.xlane.xlu1 %2002 }
 0x1ef   :  { %v2004_v38 = vmul.f32 0.00390625, %v2003_v37  ;;  %v1975_v40 = vmul.f32 %v3334_v33, %v3334_v33  ;;  %v1976_v41 = vmul.f32 %v3337_v34, %v3337_v34 }
 0x1f1   :  { %v3344_v42 = vsub.f32 %v3267_v35, %v2004_v38  ;;  %v3347_v43 = vsub.f32 %v3275_v39, %v2004_v38  ;;  %v1977_v20 = vsel %vm1901_vm0, %v1975_v40, 0.0  ;;  %v1978_v44 = vsel %vm1901_vm0, %v1976_v41, 0.0 }
 0x1f2   :  { %v1979_v36 = vadd.f32 %v1978_v44, %v1977_v20 }
 0x1f3   :  { %v2007_v45 = vmul.f32 %v3344_v42, %v3344_v42  ;;  %v2008_v46 = vmul.f32 %v3347_v43, %v3347_v43 }
 0x1f4   :  { %1980 = vadd.xlane.f32.xlu0 %v1979_v36 }
 0x1f5   :  { %v2009_v47 = vsel %vm1901_vm0, %v2007_v45, 0.0  ;;  %v2010_v35 = vsel %vm1901_vm0, %v2008_v46, 0.0 }
 0x1f6   :  { %v2011_v49 = vadd.f32 %v2010_v35, %v2009_v47 }
 0x1f8   :  { %2012 = vadd.xlane.f32.xlu1 %v2011_v49 }
 0x22a   :  { %v2035_v39 = vpop.xlane.xlu0 %2034  ;;  %v2067_v51 = vpop.xlane.xlu1 %2066 }
 0x22b   :  { %v2036_v52 = vmul.f32 0.00390625, %v2035_v39  ;;  %v2068_v54 = vmul.f32 0.00390625, %v2067_v51 }
 0x22d   :  { %v3358_v55 = vsub.f32 %v3281_v48, %v2036_v52  ;;  %v3361_v57 = vsub.f32 %v3287_v3, %v2036_v52  ;;  %v3364_v58 = vsub.f32 %v3285_v50, %v2068_v54  ;;  %v3367_v60 = vsub.f32 %v3293_v53, %v2068_v54 }
 0x22f   :  { %v2039_v61 = vmul.f32 %v3358_v55, %v3358_v55  ;;  %v2040_v62 = vmul.f32 %v3361_v57, %v3361_v57  ;;  %v2071_v63 = vmul.f32 %v3364_v58, %v3364_v58  ;;  %v2072_v48 = vmul.f32 %v3367_v60, %v3367_v60 }
 0x231   :  { %v2041_v3 = vsel %vm1901_vm0, %v2039_v61, 0.0  ;;  %v2042_v50 = vsel %vm1901_vm0, %v2040_v62, 0.0  ;;  %v2073_v0 = vsel %vm1901_vm0, %v2071_v63, 0.0  ;;  %v2074_v53 = vsel %vm1901_vm0, %v2072_v48, 0.0 }
 0x232   :  { %v2043_v1 = vadd.f32 %v2042_v50, %v2041_v3  ;;  %v2075_v2 = vadd.f32 %v2074_v53, %v2073_v0 }
 0x234   :  { %2044 = vadd.xlane.f32.xlu0 %v2043_v1  ;;  %2076 = vadd.xlane.f32.xlu1 %v2075_v2 }
 0x26a   :  { %v2099_v9 = vpop.xlane.xlu0 %2098  ;;  %v2131_v10 = vpop.xlane.xlu1 %2130 }
 0x26b   :  { %v2100_v11 = vmul.f32 0.00390625, %v2099_v9  ;;  %v2132_v14 = vmul.f32 0.00390625, %v2131_v10 }
 0x26d   :  { %v3382_v15 = vsub.f32 %v3305_v8, %v2100_v11  ;;  %v3385_v16 = vsub.f32 %v3315_v13, %v2100_v11  ;;  %v3388_v17 = vsub.f32 %v3313_v12, %v2132_v14  ;;  %v3391_v19 = vsub.f32 %v3325_v18, %v2132_v14 }
 0x26e   :  { %v1917_v21 = vpop.xlane.xlu0 %1916  ;;  %v1949_v22 = vpop.xlane.xlu1 %1948 }
 0x26f   :  { %v1918_v23 = vmul.f32 0.00390625, %v1917_v21  ;;  %v2103_v24 = vmul.f32 %v3382_v15, %v3382_v15  ;;  %v2104_v25 = vmul.f32 %v3385_v16, %v3385_v16  ;;  %v1950_v8 = vmul.f32 0.00390625, %v1949_v22 }
 0x270   :  { %v2135_v13 = vmul.f32 %v3388_v17, %v3388_v17  ;;  %v2136_v12 = vmul.f32 %v3391_v19, %v3391_v19 }
 0x271   :  { %v1919_v26 = vadd.f32 1e-05, %v1918_v23  ;;  %v2105_v18 = vsel %vm1901_vm0, %v2103_v24, 0.0  ;;  %v2106_v56 = vsel %vm1901_vm0, %v2104_v25, 0.0  ;;  %v1951_v59 = vadd.f32 1e-05, %v1950_v8 }
 0x272   :  { %v2137_v27 = vsel %vm1901_vm0, %v2135_v13, 0.0  ;;  %v2138_v28 = vsel %vm1901_vm0, %v2136_v12, 0.0  ;;  %v2107_v29 = vadd.f32 %v2106_v56, %v2105_v18 }
 0x273   :  { %2429 = vrsqrt.f32 %v1919_v26  ;;  %v2139_v30 = vadd.f32 %v2138_v28, %v2137_v27 }
 0x274   :  { %2431 = vrsqrt.f32 %v1951_v59  ;;  %2108 = vadd.xlane.f32.xlu0 %v2107_v29 }
 0x275   :  { %2140 = vadd.xlane.f32.xlu1 %v2139_v30 }
 0x27d   :  { %v2430_v31 = vpop.eup %2429 }
 0x27e   :  { %v2432_v32 = vpop.eup %2431  ;;  %v1921_v37 = vmul.f32 %v2430_v31, %v3297_v4  ;;  %v1922_v38 = vmul.f32 %v2430_v31, %v3299_v5 }
 0x27f   :  { %v1953_v40 = vmul.f32 %v2432_v32, %v3301_v6  ;;  %v1954_v41 = vmul.f32 %v2432_v32, %v3303_v7 }
 0x280   :  { %v1925_v20 = vcombine.low %v1921_v37, %v1922_v38 }
 0x281   :  { %v1957_v44 = vcombine.low %v1953_v40, %v1954_v41  ;;  %v1981_v36 = vpop.xlane.xlu0 %1980 }
 0x282   :  { %2420 = vst.sshfl [vmem:[%s3447_s2] sm:$0x33 pattern:$0x76325410] %v1925_v20  ;;  %v1982_v45 = vmul.f32 0.00390625, %v1981_v36 }
 0x283   :  { %2421 = vst.sshfl [vmem:[%s3447_s2 + $0x4] sm:$0x33 pattern:$0x76325410] %v1957_v44 }
 0x284   :  { %v1983_v46 = vadd.f32 1e-05, %v1982_v45 }
 0x285   :  { %v2013_v4 = vpop.xlane.xlu1 %2012 }
 0x286   :  { %2433 = vrsqrt.f32 %v1983_v46  ;;  %v2014_v5 = vmul.f32 0.00390625, %v2013_v4 }
 0x288   :  { %v2015_v47 = vadd.f32 1e-05, %v2014_v5 }
 0x28a   :  { %2435 = vrsqrt.f32 %v2015_v47 }
 0x290   :  { %v2434_v6 = vpop.eup %2433 }
 0x291   :  { %v1985_v7 = vmul.f32 %v2434_v6, %v3334_v33  ;;  %v1986_v35 = vmul.f32 %v2434_v6, %v3337_v34 }
 0x293   :  { %v1989_v49 = vcombine.low %v1985_v7, %v1986_v35 }
 0x294   :  { %v2436_v39 = vpop.eup %2435 }
 0x295   :  { %2422 = vst.sshfl [vmem:[%s3447_s2 + $0x8] sm:$0x33 pattern:$0x76325410] %v1989_v49  ;;  %v2017_v51 = vmul.f32 %v2436_v39, %v3344_v42  ;;  %v2018_v52 = vmul.f32 %v2436_v39, %v3347_v43 }
 0x297   :  { %v2021_v54 = vcombine.low %v2017_v51, %v2018_v52 }
 0x299   :  { %2423 = vst.sshfl [vmem:[%s3447_s2 + $0xc] sm:$0x33 pattern:$0x76325410] %v2021_v54 }
 0x2c1   :  { %v2045_v61 = vpop.xlane.xlu0 %2044  ;;  %v2077_v62 = vpop.xlane.xlu1 %2076 }
 0x2c2   :  { %v2046_v33 = vmul.f32 0.00390625, %v2045_v61  ;;  %v2078_v63 = vmul.f32 0.00390625, %v2077_v62 }
 0x2c4   :  { %v2047_v34 = vadd.f32 1e-05, %v2046_v33  ;;  %v2079_v48 = vadd.f32 1e-05, %v2078_v63 }
 0x2c6   :  { %2437 = vrsqrt.f32 %v2047_v34 }
 0x2c7   :  { %2439 = vrsqrt.f32 %v2079_v48 }
 0x2d0   :  { %v2438_v3 = vpop.eup %2437 }
 0x2d1   :  { %v2440_v50 = vpop.eup %2439  ;;  %v2049_v0 = vmul.f32 %v2438_v3, %v3358_v55  ;;  %v2050_v42 = vmul.f32 %v2438_v3, %v3361_v57 }
 0x2d2   :  { %v2081_v43 = vmul.f32 %v2440_v50, %v3364_v58  ;;  %v2082_v53 = vmul.f32 %v2440_v50, %v3367_v60 }
 0x2d3   :  { %v2053_v1 = vcombine.low %v2049_v0, %v2050_v42 }
 0x2d4   :  { %v2085_v2 = vcombine.low %v2081_v43, %v2082_v53 }
 0x2d5   :  { %2424 = vst.sshfl [vmem:[%s3447_s2 + $0x10] sm:$0x33 pattern:$0x76325410] %v2053_v1 }
 0x2d6   :  { %2425 = vst.sshfl [vmem:[%s3447_s2 + $0x14] sm:$0x33 pattern:$0x76325410] %v2085_v2 }
 0x301   :  { %v2109_v9 = vpop.xlane.xlu0 %2108 }
 0x302   :  { %v2141_v10 = vpop.xlane.xlu1 %2140  ;;  %v2110_v11 = vmul.f32 0.00390625, %v2109_v9 }
 0x303   :  { %v2142_v55 = vmul.f32 0.00390625, %v2141_v10 }
 0x304   :  { %v2111_v14 = vadd.f32 1e-05, %v2110_v11 }
 0x305   :  { %v2143_v57 = vadd.f32 1e-05, %v2142_v55 }
 0x306   :  { %2441 = vrsqrt.f32 %v2111_v14 }
 0x307   :  { %2443 = vrsqrt.f32 %v2143_v57 }
 0x310   :  { %v2442_v58 = vpop.eup %2441 }
 0x311   :  { %v2444_v60 = vpop.eup %2443  ;;  %v2113_v21 = vmul.f32 %v2442_v58, %v3382_v15  ;;  %v2114_v22 = vmul.f32 %v2442_v58, %v3385_v16 }
 0x312   :  { %v2145_v23 = vmul.f32 %v2444_v60, %v3388_v17  ;;  %v2146_v24 = vmul.f32 %v2444_v60, %v3391_v19 }
 0x313   :  { %v2117_v25 = vcombine.low %v2113_v21, %v2114_v22 }
 0x314   :  { %v2149_v8 = vcombine.low %v2145_v23, %v2146_v24 }
 0x315   :  { %2426 = vst.sshfl [vmem:[%s3447_s2 + $0x18] sm:$0x33 pattern:$0x76325410] %v2117_v25 }
 0x316   :  { %2427 = vst.sshfl [vmem:[%s3447_s2 + $0x1c] sm:$0x33 pattern:$0x76325410] %v2149_v8 }

</bundles_post_ra>
